<compile_context>
chip_gen: v7x
topology: tpu7x:2x2x1
jax: 0.10.0
libtpu: 0.0.40
codegen_flags: <defaults>
</compile_context>

<pallas_src>
import jax
import jax.numpy as jnp
from jax.experimental import pallas as pl
from jax.experimental.pallas import tpu as pltpu

F32 = jnp.float32
BF16 = jnp.bfloat16


# --------------------------- in-kernel helpers -------------------------------

def _small_k_matmul(w, x):
    """(C_out, K) @ (K, T) for tiny K via VPU broadcast-MACs (keeps the MXU free)."""
    out = w[:, 0:1] * x[0:1, :]
    for j in range(1, x.shape[0]):
        out = out + w[:, j:j + 1] * x[j:j + 1, :]
    return out


# --------------------------- PointNet encoder --------------------------------

def make_pointnet_kernel(n_layers):
    """Fused 1x1-conv (+ReLU) stack; running elementwise max into VMEM scratch,
    cross-lane reduce + single store only at the last point-tile."""
    def kernel(x_ref, *refs):
        wb = refs[:2 * n_layers]
        out_ref = refs[2 * n_layers]
        run_max = refs[2 * n_layers + 1]                    # (F_last, TILE_N) scratch
        n = pl.program_id(1)

        h = x_ref[0].astype(F32)                            # (C_in, TILE_N)
        for i in range(n_layers):
            w = wb[2 * i][...]                              # (C_out, C_in)
            b = wb[2 * i + 1][...]                          # (C_out, 1)
            if w.shape[1] < 8:                              # K=3: skip the MXU
                acc = _small_k_matmul(w, h)
            else:                                           # bf16 MXU, f32 accumulate
                acc = jnp.dot(w, h.astype(BF16), preferred_element_type=F32)
            h = jnp.maximum(acc + b, 0.0)

        @pl.when(n == 0)
        def _():
            run_max[...] = h

        @pl.when(n != 0)
        def _():
            run_max[...] = jnp.maximum(run_max[...], h)     # pure VPU per-step epilogue

        @pl.when(n == pl.num_programs(1) - 1)
        def _():
            # one XLU cross-lane reduce + one store per batch element
            out_ref[0] = jnp.max(run_max[...], axis=1, keepdims=True)
    return kernel


def pointnet_encode_maxpool(x_ncl, weights, biases, tile_n):
    """PointNetCloudEncoder + torch.max(., dim=2)[0], fused in one kernel."""
    B, C, N = x_ncl.shape
    F_last = weights[-1].shape[0]
    n_layers = len(weights)
    wb = []
    for w, b in zip(weights, biases):
        # MXU layers get bf16 weights cast once in the wrapper (halves weight DMA too)
        wb += [w if w.shape[1] < 8 else w.astype(BF16), b]
    in_specs = [pl.BlockSpec((1, C, tile_n), lambda b, n: (b, 0, n))]
    in_specs += [pl.BlockSpec(a.shape, lambda b, n, nd=a.ndim: (0,) * nd)
                 for a in wb]
    out = pl.pallas_call(
        make_pointnet_kernel(n_layers),
        grid=(B, N // tile_n),
        out_shape=jax.ShapeDtypeStruct((B, F_last, 1), F32),
        in_specs=in_specs,
        out_specs=pl.BlockSpec((1, F_last, 1), lambda b, n: (b, 0, 0)),
        scratch_shapes=[pltpu.VMEM((F_last, tile_n), F32)],
        compiler_params=pltpu.CompilerParams(
            dimension_semantics=("parallel", "arbitrary")),
    )(x_ncl, *wb)
    return out[:, :, 0]                                     # (B, F_last)


# ---------- fused g-posterior + p-prior heads + decoder g-conditioning -------

def make_latent_kernel(n_g_hidden, n_p_hidden, G, P):
    """g_posterior MLP (+reparam), p_prior MLP and the decoder global-conditioning
    projection (w1g @ g_s + b1), merged mu/logvar heads."""
    def kernel(*refs):
        x_ref, eps_ref = refs[0], refs[1]
        pos = 2
        g_hidden = refs[pos:pos + 2 * n_g_hidden]; pos += 2 * n_g_hidden
        g_head_w, g_head_b = refs[pos], refs[pos + 1]; pos += 2
        p_hidden = refs[pos:pos + 2 * n_p_hidden]; pos += 2 * n_p_hidden
        p_head_w, p_head_b = refs[pos], refs[pos + 1]; pos += 2
        w1g_t, b1_row = refs[pos], refs[pos + 1]; pos += 2
        gmu_ref, glv_ref, gs_ref, pmu_ref, plv_ref, gcond_ref = refs[pos:pos + 6]

        # g posterior
        h = x_ref[...]
        for i in range(n_g_hidden):
            h = jnp.maximum(
                jnp.dot(h, g_hidden[2 * i][...], preferred_element_type=F32)
                + g_hidden[2 * i + 1][...], 0.0)
        gh = jnp.dot(h, g_head_w[...], preferred_element_type=F32) + g_head_b[...]
        g_mu = gh[:, :G]
        g_lv = gh[:, G:]
        g_s = g_mu + jnp.exp(0.5 * g_lv) * eps_ref[...]     # reparameterize
        gmu_ref[...] = g_mu
        glv_ref[...] = g_lv
        gs_ref[...] = g_s

        # p prior ('free' base type) on the g posterior sample
        h2 = g_s
        for i in range(n_p_hidden):
            h2 = jnp.maximum(
                jnp.dot(h2, p_hidden[2 * i][...], preferred_element_type=F32)
                + p_hidden[2 * i + 1][...], 0.0)
        ph = jnp.dot(h2, p_head_w[...], preferred_element_type=F32) + p_head_b[...]
        pmu_ref[...] = ph[:, :P]
        plv_ref[...] = ph[:, P:]

        # decoder global-conditioning projection, hoisted out of the decoder grid
        gcond_ref[...] = (jnp.dot(g_s, w1g_t[...], preferred_element_type=F32)
                          + b1_row[...])                    # (B, n_flows*H)
    return kernel


def latent_heads(g_enc, eps_g, g_post, p_prior, w1g_t, b1_row):
    B = g_enc.shape[0]
    n_g = len(g_post["hidden_w"])
    n_p = len(p_prior["hidden_w"])
    G = g_post["w_head"].shape[1] // 2
    P = p_prior["w_head"].shape[1] // 2
    CH = w1g_t.shape[1]                                     # n_flows * H
    args = [g_enc, eps_g]
    for w, b in zip(g_post["hidden_w"], g_post["hidden_b"]):
        args += [w, b]
    args += [g_post["w_head"], g_post["b_head"]]
    for w, b in zip(p_prior["hidden_w"], p_prior["hidden_b"]):
        args += [w, b]
    args += [p_prior["w_head"], p_prior["b_head"], w1g_t, b1_row]
    vmem = pl.BlockSpec(memory_space=pltpu.MemorySpace.VMEM)
    outs = pl.pallas_call(
        make_latent_kernel(n_g, n_p, G, P),
        out_shape=[jax.ShapeDtypeStruct((B, G), F32)] * 3
        + [jax.ShapeDtypeStruct((B, P), F32)] * 2
        + [jax.ShapeDtypeStruct((B, CH), F32)],
        in_specs=[vmem] * len(args),
        out_specs=[vmem] * 6,
    )(*args)
    return outs                                  # g_mu, g_lv, g_s, p_mu, p_lv, gcond


# --------------------- fused RNVP decoder (inverse pass) ---------------------

def make_decoder_kernel(n_flows, P, H):
    d_half = P // 2

    def kernel(x_ref, gc_ref, w1x_ref, whead_ref, bhead_ref,
               y_ref, mu_ref, lv_ref):
        x = x_ref[0].astype(F32)                            # (P, TILE_N), lives in vregs
        for k in reversed(range(n_flows)):                  # inverse pass
            parity = k % 2
            if parity == 0:
                c0, c1 = 0, d_half                          # conditioned rows
                t0, t1 = d_half, P                          # transformed rows
            else:
                c0, c1 = d_half, P
                t0, t1 = 0, d_half
            w1x_k = w1x_ref[k]                              # (H, P)
            gk = gc_ref[0, k * H:(k + 1) * H, :]            # (H, 1) precomputed w1g@g+b1
            hx = _small_k_matmul(w1x_k[:, c0:c1], x[c0:c1, :])
            h = jnp.maximum(hx + gk, 0.0)                   # (H, TILE_N)
            # merged 2P-row head; MXU pads M to 8 anyway so no benefit in slicing W
            hm = (jnp.dot(whead_ref[k], h, preferred_element_type=F32)
                  + bhead_ref[k])                           # (2P, TILE_N)
            mu_t = hm[t0:t1, :]
            lv_t = hm[P + t0:P + t1, :]
            x_c = x[c0:c1, :]
            y_t = (x[t0:t1, :] - mu_t) * jnp.exp(-0.5 * lv_t)
            z_c = jnp.zeros_like(x_c)
            # Assemble full (P, TILE_N) tiles in registers -> one store per output per
            # flow, and carry x forward in vregs (no VMEM store->load round-trip).
            if parity == 0:
                y_full = jnp.concatenate([x_c, y_t], axis=0)
                mu_full = jnp.concatenate([x_c, mu_t], axis=0)
                lv_full = jnp.concatenate([z_c, lv_t], axis=0)
            else:
                y_full = jnp.concatenate([y_t, x_c], axis=0)
                mu_full = jnp.concatenate([mu_t, x_c], axis=0)
                lv_full = jnp.concatenate([lv_t, z_c], axis=0)
            y_ref[k, 0, :, :] = y_full
            mu_ref[k, 0, :, :] = mu_full
            lv_ref[k, 0, :, :] = lv_full
            x = y_full                                      # sample for next (earlier) flow
    return kernel


def rnvp_decoder_inverse(p_ncl, gcond, flows, tile_n):
    B, P, N = p_ncl.shape
    w1x = flows["w1x"]                                      # (n_flows, H, P)
    n_flows, H, _ = w1x.shape
    gcond3 = gcond.reshape(B, n_flows * H, 1)               # per-batch conditioning cols
    ws = [w1x, flows["w_head"], flows["b_head"]]
    in_specs = [
        pl.BlockSpec((1, P, tile_n), lambda b, n: (b, 0, n)),
        pl.BlockSpec((1, n_flows * H, 1), lambda b, n: (b, 0, 0)),
    ] + [pl.BlockSpec(a.shape, lambda b, n, nd=a.ndim: (0,) * nd) for a in ws]
    out_spec = pl.BlockSpec((n_flows, 1, P, tile_n), lambda b, n: (0, b, 0, n))
    y, mu, lv = pl.pallas_call(
        make_decoder_kernel(n_flows, P, H),
        grid=(B, N // tile_n),
        out_shape=[jax.ShapeDtypeStruct((n_flows, B, P, N), F32)] * 3,
        in_specs=in_specs,
        out_specs=[out_spec] * 3,
        compiler_params=pltpu.CompilerParams(
            # no cross-tile state anymore -> both axes parallel (feeds 2 TCs on v7x)
            dimension_semantics=("parallel", "parallel")),
    )(p_ncl, gcond3, *ws)
    return y, mu, lv


# ----------------------------- parameters ------------------------------------

def _normal(key, shape, std):
    return (std * jax.random.normal(key, shape, dtype=F32)).astype(F32)


def _init_feature_encoder(key, n_layers, d_in, d_out,
                          mu_weight_std, mu_bias, logvar_weight_std, logvar_bias):
    keys = jax.random.split(key, n_layers + 2)
    hw, hb = [], []
    for i in range(n_layers):
        hw.append(_normal(keys[i], (d_in, d_in), 1.0 / float(d_in) ** 0.5))
        hb.append(jnp.zeros((1, d_in), F32))
    w_head = jnp.concatenate(
        [_normal(keys[n_layers], (d_in, d_out), mu_weight_std),
         _normal(keys[n_layers + 1], (d_in, d_out), logvar_weight_std)], axis=1)
    b_head = jnp.concatenate(
        [jnp.full((1, d_out), mu_bias, F32),
         jnp.full((1, d_out), logvar_bias, F32)], axis=1)
    return dict(hidden_w=hw, hidden_b=hb, w_head=w_head, b_head=b_head)


def init_params(key, cfg):
    keys = iter(jax.random.split(key, 64))
    p = {}
    # PointNet encoder, channels-first weights (C_out, C_in), biases (C_out, 1)
    dims = ([cfg["pc_enc_init_n_channels"], cfg["pc_enc_init_n_features"]]
            + list(cfg["pc_enc_n_features"]))
    enc_w, enc_b = [], []
    for i in range(len(dims) - 1):
        enc_w.append(_normal(next(keys), (dims[i + 1], dims[i]),
                             1.0 / float(dims[i]) ** 0.5))
        enc_b.append(jnp.zeros((dims[i + 1], 1), F32))
    p["enc_w"], p["enc_b"] = enc_w, enc_b

    G = cfg["g_latent_space_size"]
    P = cfg["p_latent_space_size"]
    H = cfg["p_decoder_n_features"]
    nF = cfg["p_decoder_n_flows"]
    p["g0_prior_mus"] = _normal(next(keys), (1, G), 0.033)
    p["g0_prior_logvars"] = _normal(next(keys), (1, G), 0.33)
    p["g_posterior"] = _init_feature_encoder(
        next(keys), cfg["g_posterior_n_layers"], dims[-1], G,
        mu_weight_std=0.0033, mu_bias=0.0,
        logvar_weight_std=0.033, logvar_bias=0.0)
    p["p_prior"] = _init_feature_encoder(
        next(keys), cfg["p_prior_n_layers"], G, P,
        mu_weight_std=0.001, mu_bias=0.0,
        logvar_weight_std=0.01, logvar_bias=0.0)
    # LocalCondRNVPDecoder flows (weight_std=0.01), stacked + channels-first.
    # w1g is stored transposed (G, nF*H) so gcond = g_s @ w1g_t + b1_row is computed
    # once in the latent kernel and passed to the decoder as an input.
    p["decoder_flows"] = dict(
        w1x=_normal(next(keys), (nF, H, P), 0.01),
        w1g_t=_normal(next(keys), (G, nF * H), 0.01),
        b1_row=jnp.zeros((1, nF * H), F32),
        w_head=_normal(next(keys), (nF, 2 * P, H), 0.01),    # rows [:P]=mu, [P:]=logvar
        b_head=jnp.zeros((nF, 2 * P, 1), F32),
    )
    return p


# ------------------------------- forward -------------------------------------

def _pick_tile(n, cap):
    """Largest multiple-of-128 tile <= cap dividing n (or n itself if small)."""
    if n <= cap:
        return n
    t = (cap // 128) * 128
    while t >= 128:
        if n % t == 0:
            return t
        t -= 128
    return n


def forward(params, cfg, g_input, p_input, rng_key, tile_n=None):
    """Training-mode forward of Local_Cond_RNVP_MC_Global_RNVP_VAE."""
    assert cfg["util_mode"] == "training"
    B, C, N = g_input.shape
    Np = p_input.shape[2]
    G = cfg["g_latent_space_size"]
    P = cfg["p_latent_space_size"]
    n_flows = cfg["p_decoder_n_flows"]
    # encoder tiles can be large (activations are (128, T)); decoder capped for vreg
    # pressure (h is (H, T)).  Buffers stay in the KB range on all generations.
    enc_tile = _pick_tile(N, 1024) if tile_n is None else min(tile_n, N)
    dec_tile = _pick_tile(Np, 512) if tile_n is None else min(tile_n, Np)
    assert N % enc_tile == 0 and Np % dec_tile == 0

    output = {}

    # PointNet encoder + max over points (fused Pallas kernel, channels-first)
    g_enc = pointnet_encode_maxpool(
        g_input.astype(F32), params["enc_w"], params["enc_b"], enc_tile)

    # g posterior (+reparam), p prior and decoder g-conditioning in one fused kernel
    eps_g = jax.random.normal(rng_key, (B, G), dtype=F32)
    g_mu, g_lv, g_s, p_mu, p_lv, gcond = latent_heads(
        g_enc, eps_g, params["g_posterior"], params["p_prior"],
        params["decoder_flows"]["w1g_t"], params["decoder_flows"]["b1_row"])
    output["g_posterior_mus"] = g_mu
    output["g_posterior_logvars"] = g_lv
    output["g_posterior_samples"] = g_s
    output["g_prior_mus"] = [jnp.broadcast_to(params["g0_prior_mus"], (B, G))]
    output["g_prior_logvars"] = [
        jnp.broadcast_to(params["g0_prior_logvars"], (B, G))]
    output["g_prior_samples"] = [g_s]
    output["p_prior_mus"] = [jnp.broadcast_to(p_mu[:, :, None], (B, P, Np))]
    output["p_prior_logvars"] = [jnp.broadcast_to(p_lv[:, :, None], (B, P, Np))]

    # Local conditional RNVP decoder, inverse pass: one fused Pallas kernel.
    y, mus, lvs = rnvp_decoder_inverse(
        p_input.astype(F32), gcond, params["decoder_flows"], dec_tile)
    output["p_prior_samples"] = [y[k] for k in range(n_flows)] + [p_input.astype(F32)]
    output["p_prior_mus"] += [mus[k] for k in range(n_flows)]
    output["p_prior_logvars"] += [lvs[k] for k in range(n_flows)]
    return output


# --------------------------------- main ---------------------------------------

if __name__ == "__main__":
    cfg = dict(
        util_mode="training",
        deterministic=False,
        pc_enc_init_n_channels=3,
        pc_enc_init_n_features=32,
        pc_enc_n_features=[64, 128],
        g_latent_space_size=32,
        g_prior_n_flows=0,           # unused in the training forward path
        g_prior_n_features=32,       # unused in the training forward path
        g_posterior_n_layers=2,
        p_latent_space_size=3,
        p_prior_n_layers=1,
        p_decoder_n_flows=3,
        p_decoder_n_features=32,
        p_decoder_base_type="free",
        p_decoder_base_var=1.0,
    )
    key = jax.random.PRNGKey(0)
    k_in1, k_in2, k_eps, k_params = jax.random.split(key, 4)
    B, C, N = 2, 3, 256
    g_input = jax.random.normal(k_in1, (B, C, N), dtype=F32)
    p_input = jax.random.normal(k_in2, (B, C, N), dtype=F32)
    params = init_params(k_params, cfg)

    fwd = jax.jit(lambda prm, gi, pi, k: forward(prm, cfg, gi, pi, k))
    out = fwd(params, g_input, p_input, k_eps)
    jax.block_until_ready(out)

    # light sanity checks on shapes / list structure
    assert out["g_posterior_mus"].shape == (B, cfg["g_latent_space_size"])
    assert out["g_posterior_samples"].shape == (B, cfg["g_latent_space_size"])
    assert len(out["p_prior_samples"]) == cfg["p_decoder_n_flows"] + 1
    assert len(out["p_prior_mus"]) == cfg["p_decoder_n_flows"] + 1
    assert len(out["p_prior_logvars"]) == cfg["p_decoder_n_flows"] + 1
    assert out["p_prior_samples"][0].shape == (B, 3, N)
    assert out["p_prior_mus"][0].shape == (B, 3, N)
    assert bool(jnp.isfinite(out["p_prior_samples"][0]).all())
    assert bool(jnp.isfinite(out["g_posterior_samples"]).all())

    print("KERNEL_OK")
</pallas_src>

<mosaic_0001>
module attributes {stable_mosaic.version = 11 : i64} {
  func.func @kernel(%arg0: i32, %arg1: i32, %arg2: memref<1x3x256xf32, #tpu.memory_space<vmem>>, %arg3: memref<32x3xf32, #tpu.memory_space<vmem>>, %arg4: memref<32x1xf32, #tpu.memory_space<vmem>>, %arg5: memref<64x32xbf16, #tpu.memory_space<vmem>>, %arg6: memref<64x1xf32, #tpu.memory_space<vmem>>, %arg7: memref<128x64xbf16, #tpu.memory_space<vmem>>, %arg8: memref<128x1xf32, #tpu.memory_space<vmem>>, %arg9: memref<1x128x1xf32, #tpu.memory_space<vmem>>, %arg10: memref<128x256xf32, #tpu.memory_space<vmem>>) attributes {dimension_semantics = [#tpu.dimension_semantics<parallel>, #tpu.dimension_semantics<arbitrary>], iteration_bounds = array<i64: 2, 1>, scalar_prefetch = 0 : i64, scratch_operands = 1 : i64, tpu.core_type = #tpu.core_type<tc>, window_params = [{transform_indices = @transform_0, window_bounds = array<i64: 1, 3, 256>}, {pipeline_mode = #tpu.pipeline_mode<synchronous>, transform_indices = @transform_1, window_bounds = array<i64: 32, 3>}, {pipeline_mode = #tpu.pipeline_mode<synchronous>, transform_indices = @transform_2, window_bounds = array<i64: 32, 1>}, {pipeline_mode = #tpu.pipeline_mode<synchronous>, transform_indices = @transform_3, window_bounds = array<i64: 64, 32>}, {pipeline_mode = #tpu.pipeline_mode<synchronous>, transform_indices = @transform_4, window_bounds = array<i64: 64, 1>}, {pipeline_mode = #tpu.pipeline_mode<synchronous>, transform_indices = @transform_5, window_bounds = array<i64: 128, 64>}, {pipeline_mode = #tpu.pipeline_mode<synchronous>, transform_indices = @transform_6, window_bounds = array<i64: 128, 1>}, {transform_indices = @transform_7, window_bounds = array<i64: 1, 128, 1>}]} {
    %c0 = arith.constant 0 : index
    %c0_0 = arith.constant 0 : index
    %c0_1 = arith.constant 0 : index
    %0 = vector.load %arg2[%c0, %c0_0, %c0_1] : memref<1x3x256xf32, #tpu.memory_space<vmem>>, vector<1x3x256xf32>
    %1 = vector.shape_cast %0 : vector<1x3x256xf32> to vector<3x256xf32>
    %c0_2 = arith.constant 0 : index
    %c0_3 = arith.constant 0 : index
    %2 = vector.load %arg3[%c0_2, %c0_3] : memref<32x3xf32, #tpu.memory_space<vmem>>, vector<32x3xf32>
    %c0_4 = arith.constant 0 : index
    %c0_5 = arith.constant 0 : index
    %3 = vector.load %arg4[%c0_4, %c0_5] : memref<32x1xf32, #tpu.memory_space<vmem>>, vector<32x1xf32>
    %4 = vector.extract_strided_slice %2 {offsets = [0, 0], sizes = [32, 1], strides = [1, 1]} : vector<32x3xf32> to vector<32x1xf32>
    %5 = vector.extract_strided_slice %1 {offsets = [0, 0], sizes = [1, 256], strides = [1, 1]} : vector<3x256xf32> to vector<1x256xf32>
    %6 = vector.broadcast %4 : vector<32x1xf32> to vector<32x256xf32>
    %7 = vector.broadcast %5 : vector<1x256xf32> to vector<32x256xf32>
    %8 = arith.mulf %6, %7 : vector<32x256xf32>
    %9 = vector.extract_strided_slice %2 {offsets = [0, 1], sizes = [32, 1], strides = [1, 1]} : vector<32x3xf32> to vector<32x1xf32>
    %10 = vector.extract_strided_slice %1 {offsets = [1, 0], sizes = [1, 256], strides = [1, 1]} : vector<3x256xf32> to vector<1x256xf32>
    %11 = vector.broadcast %9 : vector<32x1xf32> to vector<32x256xf32>
    %12 = vector.broadcast %10 : vector<1x256xf32> to vector<32x256xf32>
    %13 = arith.mulf %11, %12 : vector<32x256xf32>
    %14 = arith.addf %8, %13 : vector<32x256xf32>
    %15 = vector.extract_strided_slice %2 {offsets = [0, 2], sizes = [32, 1], strides = [1, 1]} : vector<32x3xf32> to vector<32x1xf32>
    %16 = vector.extract_strided_slice %1 {offsets = [2, 0], sizes = [1, 256], strides = [1, 1]} : vector<3x256xf32> to vector<1x256xf32>
    %17 = vector.broadcast %15 : vector<32x1xf32> to vector<32x256xf32>
    %18 = vector.broadcast %16 : vector<1x256xf32> to vector<32x256xf32>
    %19 = arith.mulf %17, %18 : vector<32x256xf32>
    %20 = arith.addf %14, %19 : vector<32x256xf32>
    %21 = vector.broadcast %3 : vector<32x1xf32> to vector<32x256xf32>
    %22 = arith.addf %20, %21 : vector<32x256xf32>
    %cst = arith.constant 0.000000e+00 : f32
    %23 = vector.broadcast %cst : f32 to vector<32x256xf32>
    %24 = arith.maximumf %22, %23 : vector<32x256xf32>
    %c0_6 = arith.constant 0 : index
    %c0_7 = arith.constant 0 : index
    %25 = vector.load %arg5[%c0_6, %c0_7] : memref<64x32xbf16, #tpu.memory_space<vmem>>, vector<64x32xbf16>
    %c0_8 = arith.constant 0 : index
    %c0_9 = arith.constant 0 : index
    %26 = vector.load %arg6[%c0_8, %c0_9] : memref<64x1xf32, #tpu.memory_space<vmem>>, vector<64x1xf32>
    %27 = arith.truncf %24 : vector<32x256xf32> to vector<32x256xbf16>
    %cst_10 = arith.constant dense<0.000000e+00> : vector<64x256xf32>
    %28 = tpu.matmul %25, %27, %cst_10 {dimension_numbers = #tpu.dot_dimension_numbers<[1], [0], [0], [1], [0, 0, 1, 1], [], []>} : vector<64x32xbf16>, vector<32x256xbf16>, vector<64x256xf32> -> vector<64x256xf32>
    %29 = vector.broadcast %26 : vector<64x1xf32> to vector<64x256xf32>
    %30 = arith.addf %28, %29 : vector<64x256xf32>
    %cst_11 = arith.constant 0.000000e+00 : f32
    %31 = vector.broadcast %cst_11 : f32 to vector<64x256xf32>
    %32 = arith.maximumf %30, %31 : vector<64x256xf32>
    %c0_12 = arith.constant 0 : index
    %c0_13 = arith.constant 0 : index
    %33 = vector.load %arg7[%c0_12, %c0_13] : memref<128x64xbf16, #tpu.memory_space<vmem>>, vector<128x64xbf16>
    %c0_14 = arith.constant 0 : index
    %c0_15 = arith.constant 0 : index
    %34 = vector.load %arg8[%c0_14, %c0_15] : memref<128x1xf32, #tpu.memory_space<vmem>>, vector<128x1xf32>
    %35 = arith.truncf %32 : vector<64x256xf32> to vector<64x256xbf16>
    %cst_16 = arith.constant dense<0.000000e+00> : vector<128x256xf32>
    %36 = tpu.matmul %33, %35, %cst_16 {dimension_numbers = #tpu.dot_dimension_numbers<[1], [0], [0], [1], [0, 0, 1, 1], [], []>} : vector<128x64xbf16>, vector<64x256xbf16>, vector<128x256xf32> -> vector<128x256xf32>
    %37 = vector.broadcast %34 : vector<128x1xf32> to vector<128x256xf32>
    %38 = arith.addf %36, %37 : vector<128x256xf32>
    %cst_17 = arith.constant 0.000000e+00 : f32
    %39 = vector.broadcast %cst_17 : f32 to vector<128x256xf32>
    %40 = arith.maximumf %38, %39 : vector<128x256xf32>
    %c0_i32 = arith.constant 0 : i32
    %41 = arith.cmpi eq, %arg1, %c0_i32 : i32
    %42 = arith.extui %41 : i1 to i32
    %c0_i32_18 = arith.constant 0 : i32
    %43 = arith.cmpi ne, %42, %c0_i32_18 : i32
    scf.if %43 {
      %c0_23 = arith.constant 0 : index
      %c0_24 = arith.constant 0 : index
      %50 = vector.load %arg10[%c0_23, %c0_24] : memref<128x256xf32, #tpu.memory_space<vmem>>, vector<128x256xf32>
      tpu.vector_store %arg10[%c0_23, %c0_24], %40 {strides = array<i32>} : memref<128x256xf32, #tpu.memory_space<vmem>>, vector<128x256xf32>,
    } else {
    }
    %c0_i32_19 = arith.constant 0 : i32
    %44 = arith.cmpi ne, %arg1, %c0_i32_19 : i32
    %45 = arith.extui %44 : i1 to i32
    %c0_i32_20 = arith.constant 0 : i32
    %46 = arith.cmpi ne, %45, %c0_i32_20 : i32
    scf.if %46 {
      %c0_23 = arith.constant 0 : index
      %c0_24 = arith.constant 0 : index
      %50 = vector.load %arg10[%c0_23, %c0_24] : memref<128x256xf32, #tpu.memory_space<vmem>>, vector<128x256xf32>
      %51 = arith.maximumf %50, %40 : vector<128x256xf32>
      %c0_25 = arith.constant 0 : index
      %c0_26 = arith.constant 0 : index
      %52 = vector.load %arg10[%c0_25, %c0_26] : memref<128x256xf32, #tpu.memory_space<vmem>>, vector<128x256xf32>
      tpu.vector_store %arg10[%c0_25, %c0_26], %51 {strides = array<i32>} : memref<128x256xf32, #tpu.memory_space<vmem>>, vector<128x256xf32>,
    } else {
    }
    %c0_i32_21 = arith.constant 0 : i32
    %47 = arith.cmpi eq, %arg1, %c0_i32_21 : i32
    %48 = arith.extui %47 : i1 to i32
    %c0_i32_22 = arith.constant 0 : i32
    %49 = arith.cmpi ne, %48, %c0_i32_22 : i32
    scf.if %49 {
      %c0_23 = arith.constant 0 : index
      %c0_24 = arith.constant 0 : index
      %50 = vector.load %arg10[%c0_23, %c0_24] : memref<128x256xf32, #tpu.memory_space<vmem>>, vector<128x256xf32>
      %cst_25 = arith.constant dense<0xFF800000> : vector<128xf32>
      %51 = vector.multi_reduction <maximumf>, %50, %cst_25 [1] : vector<128x256xf32> to vector<128xf32>
      %52 = vector.shape_cast %51 : vector<128xf32> to vector<128x1xf32>
      %c0_26 = arith.constant 0 : index
      %c0_27 = arith.constant 0 : index
      %c0_28 = arith.constant 0 : index
      %53 = vector.load %arg9[%c0_26, %c0_27, %c0_28] : memref<1x128x1xf32, #tpu.memory_space<vmem>>, vector<1x128x1xf32>
      %54 = vector.shape_cast %53 : vector<1x128x1xf32> to vector<128x1xf32>
      %55 = vector.shape_cast %52 : vector<128x1xf32> to vector<1x128x1xf32>
      tpu.vector_store %arg9[%c0_26, %c0_27, %c0_28], %55 {strides = array<i32>} : memref<1x128x1xf32, #tpu.memory_space<vmem>>, vector<1x128x1xf32>,
    } else {
    }
    return
  }
  func.func @transform_0(%arg0: i32, %arg1: i32) -> (i32, i32, i32) {
    %c0_i32 = arith.constant 0 : i32
    %c0_i32_0 = arith.constant 0 : i32
    return %arg0, %c0_i32, %arg1 : i32, i32, i32
  }
  func.func @transform_1(%arg0: i32, %arg1: i32) -> (i32, i32) {
    %c0_i32 = arith.constant 0 : i32
    %c0_i32_0 = arith.constant 0 : i32
    %c0_i32_1 = arith.constant 0 : i32
    return %c0_i32, %c0_i32_0 : i32, i32
  }
  func.func @transform_2(%arg0: i32, %arg1: i32) -> (i32, i32) {
    %c0_i32 = arith.constant 0 : i32
    %c0_i32_0 = arith.constant 0 : i32
    %c0_i32_1 = arith.constant 0 : i32
    return %c0_i32, %c0_i32_0 : i32, i32
  }
  func.func @transform_3(%arg0: i32, %arg1: i32) -> (i32, i32) {
    %c0_i32 = arith.constant 0 : i32
    %c0_i32_0 = arith.constant 0 : i32
    %c0_i32_1 = arith.constant 0 : i32
    return %c0_i32, %c0_i32_0 : i32, i32
  }
  func.func @transform_4(%arg0: i32, %arg1: i32) -> (i32, i32) {
    %c0_i32 = arith.constant 0 : i32
    %c0_i32_0 = arith.constant 0 : i32
    %c0_i32_1 = arith.constant 0 : i32
    return %c0_i32, %c0_i32_0 : i32, i32
  }
  func.func @transform_5(%arg0: i32, %arg1: i32) -> (i32, i32) {
    %c0_i32 = arith.constant 0 : i32
    %c0_i32_0 = arith.constant 0 : i32
    %c0_i32_1 = arith.constant 0 : i32
    return %c0_i32, %c0_i32_0 : i32, i32
  }
  func.func @transform_6(%arg0: i32, %arg1: i32) -> (i32, i32) {
    %c0_i32 = arith.constant 0 : i32
    %c0_i32_0 = arith.constant 0 : i32
    %c0_i32_1 = arith.constant 0 : i32
    return %c0_i32, %c0_i32_0 : i32, i32
  }
  func.func @transform_7(%arg0: i32, %arg1: i32) -> (i32, i32, i32) {
    %c0_i32 = arith.constant 0 : i32
    %c0_i32_0 = arith.constant 0 : i32
    %c0_i32_1 = arith.constant 0 : i32
    return %arg0, %c0_i32, %c0_i32_0 : i32, i32, i32
  }
}

module attributes {stable_mosaic.version = 11 : i64} {
  func.func @kernel(%arg0: memref<2x128xf32, #tpu.memory_space<vmem>>, %arg1: memref<2x32xf32, #tpu.memory_space<vmem>>, %arg2: memref<128x128xf32, #tpu.memory_space<vmem>>, %arg3: memref<1x128xf32, #tpu.memory_space<vmem>>, %arg4: memref<128x128xf32, #tpu.memory_space<vmem>>, %arg5: memref<1x128xf32, #tpu.memory_space<vmem>>, %arg6: memref<128x64xf32, #tpu.memory_space<vmem>>, %arg7: memref<1x64xf32, #tpu.memory_space<vmem>>, %arg8: memref<32x32xf32, #tpu.memory_space<vmem>>, %arg9: memref<1x32xf32, #tpu.memory_space<vmem>>, %arg10: memref<32x6xf32, #tpu.memory_space<vmem>>, %arg11: memref<1x6xf32, #tpu.memory_space<vmem>>, %arg12: memref<32x96xf32, #tpu.memory_space<vmem>>, %arg13: memref<1x96xf32, #tpu.memory_space<vmem>>, %arg14: memref<2x32xf32, #tpu.memory_space<vmem>>, %arg15: memref<2x32xf32, #tpu.memory_space<vmem>>, %arg16: memref<2x32xf32, #tpu.memory_space<vmem>>, %arg17: memref<2x3xf32, #tpu.memory_space<vmem>>, %arg18: memref<2x3xf32, #tpu.memory_space<vmem>>, %arg19: memref<2x96xf32, #tpu.memory_space<vmem>>) attributes {dimension_semantics = [], scalar_prefetch = 0 : i64, scratch_operands = 0 : i64, tpu.core_type = #tpu.core_type<tc>} {
    %c0 = arith.constant 0 : index
    %c0_0 = arith.constant 0 : index
    %0 = vector.load %arg0[%c0, %c0_0] : memref<2x128xf32, #tpu.memory_space<vmem>>, vector<2x128xf32>
    %c0_1 = arith.constant 0 : index
    %c0_2 = arith.constant 0 : index
    %1 = vector.load %arg2[%c0_1, %c0_2] : memref<128x128xf32, #tpu.memory_space<vmem>>, vector<128x128xf32>
    %cst = arith.constant dense<0.000000e+00> : vector<2x128xf32>
    %2 = tpu.matmul %0, %1, %cst {dimension_numbers = #tpu.dot_dimension_numbers<[1], [0], [0], [1], [0, 0, 1, 1], [], []>} : vector<2x128xf32>, vector<128x128xf32>, vector<2x128xf32> -> vector<2x128xf32>
    %c0_3 = arith.constant 0 : index
    %c0_4 = arith.constant 0 : index
    %3 = vector.load %arg3[%c0_3, %c0_4] : memref<1x128xf32, #tpu.memory_space<vmem>>, vector<1x128xf32>
    %4 = vector.broadcast %3 : vector<1x128xf32> to vector<2x128xf32>
    %5 = arith.addf %2, %4 : vector<2x128xf32>
    %cst_5 = arith.constant 0.000000e+00 : f32
    %6 = vector.broadcast %cst_5 : f32 to vector<2x128xf32>
    %7 = arith.maximumf %5, %6 : vector<2x128xf32>
    %c0_6 = arith.constant 0 : index
    %c0_7 = arith.constant 0 : index
    %8 = vector.load %arg4[%c0_6, %c0_7] : memref<128x128xf32, #tpu.memory_space<vmem>>, vector<128x128xf32>
    %cst_8 = arith.constant dense<0.000000e+00> : vector<2x128xf32>
    %9 = tpu.matmul %7, %8, %cst_8 {dimension_numbers = #tpu.dot_dimension_numbers<[1], [0], [0], [1], [0, 0, 1, 1], [], []>} : vector<2x128xf32>, vector<128x128xf32>, vector<2x128xf32> -> vector<2x128xf32>
    %c0_9 = arith.constant 0 : index
    %c0_10 = arith.constant 0 : index
    %10 = vector.load %arg5[%c0_9, %c0_10] : memref<1x128xf32, #tpu.memory_space<vmem>>, vector<1x128xf32>
    %11 = vector.broadcast %10 : vector<1x128xf32> to vector<2x128xf32>
    %12 = arith.addf %9, %11 : vector<2x128xf32>
    %cst_11 = arith.constant 0.000000e+00 : f32
    %13 = vector.broadcast %cst_11 : f32 to vector<2x128xf32>
    %14 = arith.maximumf %12, %13 : vector<2x128xf32>
    %c0_12 = arith.constant 0 : index
    %c0_13 = arith.constant 0 : index
    %15 = vector.load %arg6[%c0_12, %c0_13] : memref<128x64xf32, #tpu.memory_space<vmem>>, vector<128x64xf32>
    %cst_14 = arith.constant dense<0.000000e+00> : vector<2x64xf32>
    %16 = tpu.matmul %14, %15, %cst_14 {dimension_numbers = #tpu.dot_dimension_numbers<[1], [0], [0], [1], [0, 0, 1, 1], [], []>} : vector<2x128xf32>, vector<128x64xf32>, vector<2x64xf32> -> vector<2x64xf32>
    %c0_15 = arith.constant 0 : index
    %c0_16 = arith.constant 0 : index
    %17 = vector.load %arg7[%c0_15, %c0_16] : memref<1x64xf32, #tpu.memory_space<vmem>>, vector<1x64xf32>
    %18 = vector.broadcast %17 : vector<1x64xf32> to vector<2x64xf32>
    %19 = arith.addf %16, %18 : vector<2x64xf32>
    %20 = vector.extract_strided_slice %19 {offsets = [0, 0], sizes = [2, 32], strides = [1, 1]} : vector<2x64xf32> to vector<2x32xf32>
    %21 = vector.extract_strided_slice %19 {offsets = [0, 32], sizes = [2, 32], strides = [1, 1]} : vector<2x64xf32> to vector<2x32xf32>
    %cst_17 = arith.constant 5.000000e-01 : f32
    %22 = vector.broadcast %cst_17 : f32 to vector<2x32xf32>
    %23 = arith.mulf %22, %21 : vector<2x32xf32>
    %24 = math.exp %23 : vector<2x32xf32>
    %c0_18 = arith.constant 0 : index
    %c0_19 = arith.constant 0 : index
    %25 = vector.load %arg1[%c0_18, %c0_19] : memref<2x32xf32, #tpu.memory_space<vmem>>, vector<2x32xf32>
    %26 = arith.mulf %24, %25 : vector<2x32xf32>
    %27 = arith.addf %20, %26 : vector<2x32xf32>
    %c0_20 = arith.constant 0 : index
    %c0_21 = arith.constant 0 : index
    %28 = vector.load %arg14[%c0_20, %c0_21] : memref<2x32xf32, #tpu.memory_space<vmem>>, vector<2x32xf32>
    tpu.vector_store %arg14[%c0_20, %c0_21], %20 {strides = array<i32>} : memref<2x32xf32, #tpu.memory_space<vmem>>, vector<2x32xf32>,
    %c0_22 = arith.constant 0 : index
    %c0_23 = arith.constant 0 : index
    %29 = vector.load %arg15[%c0_22, %c0_23] : memref<2x32xf32, #tpu.memory_space<vmem>>, vector<2x32xf32>
    tpu.vector_store %arg15[%c0_22, %c0_23], %21 {strides = array<i32>} : memref<2x32xf32, #tpu.memory_space<vmem>>, vector<2x32xf32>,
    %c0_24 = arith.constant 0 : index
    %c0_25 = arith.constant 0 : index
    %30 = vector.load %arg16[%c0_24, %c0_25] : memref<2x32xf32, #tpu.memory_space<vmem>>, vector<2x32xf32>
    tpu.vector_store %arg16[%c0_24, %c0_25], %27 {strides = array<i32>} : memref<2x32xf32, #tpu.memory_space<vmem>>, vector<2x32xf32>,
    %c0_26 = arith.constant 0 : index
    %c0_27 = arith.constant 0 : index
    %31 = vector.load %arg8[%c0_26, %c0_27] : memref<32x32xf32, #tpu.memory_space<vmem>>, vector<32x32xf32>
    %cst_28 = arith.constant dense<0.000000e+00> : vector<2x32xf32>
    %32 = tpu.matmul %27, %31, %cst_28 {dimension_numbers = #tpu.dot_dimension_numbers<[1], [0], [0], [1], [0, 0, 1, 1], [], []>} : vector<2x32xf32>, vector<32x32xf32>, vector<2x32xf32> -> vector<2x32xf32>
    %c0_29 = arith.constant 0 : index
    %c0_30 = arith.constant 0 : index
    %33 = vector.load %arg9[%c0_29, %c0_30] : memref<1x32xf32, #tpu.memory_space<vmem>>, vector<1x32xf32>
    %34 = vector.broadcast %33 : vector<1x32xf32> to vector<2x32xf32>
    %35 = arith.addf %32, %34 : vector<2x32xf32>
    %cst_31 = arith.constant 0.000000e+00 : f32
    %36 = vector.broadcast %cst_31 : f32 to vector<2x32xf32>
    %37 = arith.maximumf %35, %36 : vector<2x32xf32>
    %c0_32 = arith.constant 0 : index
    %c0_33 = arith.constant 0 : index
    %38 = vector.load %arg10[%c0_32, %c0_33] : memref<32x6xf32, #tpu.memory_space<vmem>>, vector<32x6xf32>
    %cst_34 = arith.constant dense<0.000000e+00> : vector<2x6xf32>
    %39 = tpu.matmul %37, %38, %cst_34 {dimension_numbers = #tpu.dot_dimension_numbers<[1], [0], [0], [1], [0, 0, 1, 1], [], []>} : vector<2x32xf32>, vector<32x6xf32>, vector<2x6xf32> -> vector<2x6xf32>
    %c0_35 = arith.constant 0 : index
    %c0_36 = arith.constant 0 : index
    %40 = vector.load %arg11[%c0_35, %c0_36] : memref<1x6xf32, #tpu.memory_space<vmem>>, vector<1x6xf32>
    %41 = vector.broadcast %40 : vector<1x6xf32> to vector<2x6xf32>
    %42 = arith.addf %39, %41 : vector<2x6xf32>
    %43 = vector.extract_strided_slice %42 {offsets = [0, 0], sizes = [2, 3], strides = [1, 1]} : vector<2x6xf32> to vector<2x3xf32>
    %c0_37 = arith.constant 0 : index
    %c0_38 = arith.constant 0 : index
    %44 = vector.load %arg17[%c0_37, %c0_38] : memref<2x3xf32, #tpu.memory_space<vmem>>, vector<2x3xf32>
    tpu.vector_store %arg17[%c0_37, %c0_38], %43 {strides = array<i32>} : memref<2x3xf32, #tpu.memory_space<vmem>>, vector<2x3xf32>,
    %45 = vector.extract_strided_slice %42 {offsets = [0, 3], sizes = [2, 3], strides = [1, 1]} : vector<2x6xf32> to vector<2x3xf32>
    %c0_39 = arith.constant 0 : index
    %c0_40 = arith.constant 0 : index
    %46 = vector.load %arg18[%c0_39, %c0_40] : memref<2x3xf32, #tpu.memory_space<vmem>>, vector<2x3xf32>
    tpu.vector_store %arg18[%c0_39, %c0_40], %45 {strides = array<i32>} : memref<2x3xf32, #tpu.memory_space<vmem>>, vector<2x3xf32>,
    %c0_41 = arith.constant 0 : index
    %c0_42 = arith.constant 0 : index
    %47 = vector.load %arg12[%c0_41, %c0_42] : memref<32x96xf32, #tpu.memory_space<vmem>>, vector<32x96xf32>
    %cst_43 = arith.constant dense<0.000000e+00> : vector<2x96xf32>
    %48 = tpu.matmul %27, %47, %cst_43 {dimension_numbers = #tpu.dot_dimension_numbers<[1], [0], [0], [1], [0, 0, 1, 1], [], []>} : vector<2x32xf32>, vector<32x96xf32>, vector<2x96xf32> -> vector<2x96xf32>
    %c0_44 = arith.constant 0 : index
    %c0_45 = arith.constant 0 : index
    %49 = vector.load %arg13[%c0_44, %c0_45] : memref<1x96xf32, #tpu.memory_space<vmem>>, vector<1x96xf32>
    %50 = vector.broadcast %49 : vector<1x96xf32> to vector<2x96xf32>
    %51 = arith.addf %48, %50 : vector<2x96xf32>
    %c0_46 = arith.constant 0 : index
    %c0_47 = arith.constant 0 : index
    %52 = vector.load %arg19[%c0_46, %c0_47] : memref<2x96xf32, #tpu.memory_space<vmem>>, vector<2x96xf32>
    tpu.vector_store %arg19[%c0_46, %c0_47], %51 {strides = array<i32>} : memref<2x96xf32, #tpu.memory_space<vmem>>, vector<2x96xf32>,
    return
  }
}

module attributes {stable_mosaic.version = 11 : i64} {
  func.func @kernel(%arg0: i32, %arg1: i32, %arg2: memref<1x3x256xf32, #tpu.memory_space<vmem>>, %arg3: memref<1x96x1xf32, #tpu.memory_space<vmem>>, %arg4: memref<3x32x3xf32, #tpu.memory_space<vmem>>, %arg5: memref<3x6x32xf32, #tpu.memory_space<vmem>>, %arg6: memref<3x6x1xf32, #tpu.memory_space<vmem>>, %arg7: memref<3x1x3x256xf32, #tpu.memory_space<vmem>>, %arg8: memref<3x1x3x256xf32, #tpu.memory_space<vmem>>, %arg9: memref<3x1x3x256xf32, #tpu.memory_space<vmem>>) attributes {dimension_semantics = [#tpu.dimension_semantics<parallel>, #tpu.dimension_semantics<parallel>], iteration_bounds = array<i64: 2, 1>, scalar_prefetch = 0 : i64, scratch_operands = 0 : i64, tpu.core_type = #tpu.core_type<tc>, window_params = [{transform_indices = @transform_0, window_bounds = array<i64: 1, 3, 256>}, {transform_indices = @transform_1, window_bounds = array<i64: 1, 96, 1>}, {pipeline_mode = #tpu.pipeline_mode<synchronous>, transform_indices = @transform_2, window_bounds = array<i64: 3, 32, 3>}, {pipeline_mode = #tpu.pipeline_mode<synchronous>, transform_indices = @transform_3, window_bounds = array<i64: 3, 6, 32>}, {pipeline_mode = #tpu.pipeline_mode<synchronous>, transform_indices = @transform_4, window_bounds = array<i64: 3, 6, 1>}, {transform_indices = @transform_5, window_bounds = array<i64: 3, 1, 3, 256>}, {transform_indices = @transform_6, window_bounds = array<i64: 3, 1, 3, 256>}, {transform_indices = @transform_7, window_bounds = array<i64: 3, 1, 3, 256>}]} {
    %c0 = arith.constant 0 : index
    %c0_0 = arith.constant 0 : index
    %c0_1 = arith.constant 0 : index
    %0 = vector.load %arg2[%c0, %c0_0, %c0_1] : memref<1x3x256xf32, #tpu.memory_space<vmem>>, vector<1x3x256xf32>
    %1 = vector.shape_cast %0 : vector<1x3x256xf32> to vector<3x256xf32>
    %c2 = arith.constant 2 : index
    %c0_2 = arith.constant 0 : index
    %c0_3 = arith.constant 0 : index
    %2 = vector.load %arg4[%c2, %c0_2, %c0_3] : memref<3x32x3xf32, #tpu.memory_space<vmem>>, vector<1x32x3xf32>
    %3 = vector.shape_cast %2 : vector<1x32x3xf32> to vector<32x3xf32>
    %c0_4 = arith.constant 0 : index
    %c64 = arith.constant 64 : index
    %c0_5 = arith.constant 0 : index
    %4 = vector.load %arg3[%c0_4, %c64, %c0_5] : memref<1x96x1xf32, #tpu.memory_space<vmem>>, vector<1x32x1xf32>
    %5 = vector.shape_cast %4 : vector<1x32x1xf32> to vector<32x1xf32>
    %6 = vector.extract_strided_slice %3 {offsets = [0, 0], sizes = [32, 1], strides = [1, 1]} : vector<32x3xf32> to vector<32x1xf32>
    %7 = vector.extract_strided_slice %1 {offsets = [0, 0], sizes = [1, 256], strides = [1, 1]} : vector<3x256xf32> to vector<1x256xf32>
    %8 = vector.broadcast %6 : vector<32x1xf32> to vector<32x256xf32>
    %9 = vector.broadcast %7 : vector<1x256xf32> to vector<32x256xf32>
    %10 = arith.mulf %8, %9 : vector<32x256xf32>
    %11 = vector.broadcast %5 : vector<32x1xf32> to vector<32x256xf32>
    %12 = arith.addf %10, %11 : vector<32x256xf32>
    %cst = arith.constant 0.000000e+00 : f32
    %13 = vector.broadcast %cst : f32 to vector<32x256xf32>
    %14 = arith.maximumf %12, %13 : vector<32x256xf32>
    %c2_6 = arith.constant 2 : index
    %c0_7 = arith.constant 0 : index
    %c0_8 = arith.constant 0 : index
    %15 = vector.load %arg5[%c2_6, %c0_7, %c0_8] : memref<3x6x32xf32, #tpu.memory_space<vmem>>, vector<1x6x32xf32>
    %16 = vector.shape_cast %15 : vector<1x6x32xf32> to vector<6x32xf32>
    %cst_9 = arith.constant dense<0.000000e+00> : vector<6x256xf32>
    %17 = tpu.matmul %16, %14, %cst_9 {dimension_numbers = #tpu.dot_dimension_numbers<[1], [0], [0], [1], [0, 0, 1, 1], [], []>} : vector<6x32xf32>, vector<32x256xf32>, vector<6x256xf32> -> vector<6x256xf32>
    %c2_10 = arith.constant 2 : index
    %c0_11 = arith.constant 0 : index
    %c0_12 = arith.constant 0 : index
    %18 = vector.load %arg6[%c2_10, %c0_11, %c0_12] : memref<3x6x1xf32, #tpu.memory_space<vmem>>, vector<1x6x1xf32>
    %19 = vector.shape_cast %18 : vector<1x6x1xf32> to vector<6x1xf32>
    %20 = vector.broadcast %19 : vector<6x1xf32> to vector<6x256xf32>
    %21 = arith.addf %17, %20 : vector<6x256xf32>
    %22 = vector.extract_strided_slice %21 {offsets = [1, 0], sizes = [2, 256], strides = [1, 1]} : vector<6x256xf32> to vector<2x256xf32>
    %23 = vector.extract_strided_slice %21 {offsets = [4, 0], sizes = [2, 256], strides = [1, 1]} : vector<6x256xf32> to vector<2x256xf32>
    %24 = vector.extract_strided_slice %1 {offsets = [0, 0], sizes = [1, 256], strides = [1, 1]} : vector<3x256xf32> to vector<1x256xf32>
    %25 = vector.extract_strided_slice %1 {offsets = [1, 0], sizes = [2, 256], strides = [1, 1]} : vector<3x256xf32> to vector<2x256xf32>
    %26 = arith.subf %25, %22 : vector<2x256xf32>
    %cst_13 = arith.constant -5.000000e-01 : f32
    %27 = vector.broadcast %cst_13 : f32 to vector<2x256xf32>
    %28 = arith.mulf %27, %23 : vector<2x256xf32>
    %29 = math.exp %28 : vector<2x256xf32>
    %30 = arith.mulf %26, %29 : vector<2x256xf32>
    %cst_14 = arith.constant 0.000000e+00 : f32
    %31 = vector.broadcast %cst_14 : f32 to vector<1x256xf32>
    %32 = tpu.concatenate %24, %30 in 0 : vector<1x256xf32>, vector<2x256xf32> -> vector<3x256xf32>
    %33 = tpu.concatenate %24, %22 in 0 : vector<1x256xf32>, vector<2x256xf32> -> vector<3x256xf32>
    %34 = tpu.concatenate %31, %23 in 0 : vector<1x256xf32>, vector<2x256xf32> -> vector<3x256xf32>
    %c2_15 = arith.constant 2 : index
    %c0_16 = arith.constant 0 : index
    %c0_17 = arith.constant 0 : index
    %c0_18 = arith.constant 0 : index
    %35 = vector.load %arg7[%c2_15, %c0_16, %c0_17, %c0_18] : memref<3x1x3x256xf32, #tpu.memory_space<vmem>>, vector<1x1x3x256xf32>
    %36 = vector.shape_cast %35 : vector<1x1x3x256xf32> to vector<3x256xf32>
    %37 = vector.shape_cast %32 : vector<3x256xf32> to vector<1x1x3x256xf32>
    tpu.vector_store %arg7[%c2_15, %c0_16, %c0_17, %c0_18], %37 {strides = array<i32>} : memref<3x1x3x256xf32, #tpu.memory_space<vmem>>, vector<1x1x3x256xf32>,
    %c2_19 = arith.constant 2 : index
    %c0_20 = arith.constant 0 : index
    %c0_21 = arith.constant 0 : index
    %c0_22 = arith.constant 0 : index
    %38 = vector.load %arg8[%c2_19, %c0_20, %c0_21, %c0_22] : memref<3x1x3x256xf32, #tpu.memory_space<vmem>>, vector<1x1x3x256xf32>
    %39 = vector.shape_cast %38 : vector<1x1x3x256xf32> to vector<3x256xf32>
    %40 = vector.shape_cast %33 : vector<3x256xf32> to vector<1x1x3x256xf32>
    tpu.vector_store %arg8[%c2_19, %c0_20, %c0_21, %c0_22], %40 {strides = array<i32>} : memref<3x1x3x256xf32, #tpu.memory_space<vmem>>, vector<1x1x3x256xf32>,
    %c2_23 = arith.constant 2 : index
    %c0_24 = arith.constant 0 : index
    %c0_25 = arith.constant 0 : index
    %c0_26 = arith.constant 0 : index
    %41 = vector.load %arg9[%c2_23, %c0_24, %c0_25, %c0_26] : memref<3x1x3x256xf32, #tpu.memory_space<vmem>>, vector<1x1x3x256xf32>
    %42 = vector.shape_cast %41 : vector<1x1x3x256xf32> to vector<3x256xf32>
    %43 = vector.shape_cast %34 : vector<3x256xf32> to vector<1x1x3x256xf32>
    tpu.vector_store %arg9[%c2_23, %c0_24, %c0_25, %c0_26], %43 {strides = array<i32>} : memref<3x1x3x256xf32, #tpu.memory_space<vmem>>, vector<1x1x3x256xf32>,
    %c1 = arith.constant 1 : index
    %c0_27 = arith.constant 0 : index
    %c0_28 = arith.constant 0 : index
    %44 = vector.load %arg4[%c1, %c0_27, %c0_28] : memref<3x32x3xf32, #tpu.memory_space<vmem>>, vector<1x32x3xf32>
    %45 = vector.shape_cast %44 : vector<1x32x3xf32> to vector<32x3xf32>
    %c0_29 = arith.constant 0 : index
    %c32 = arith.constant 32 : index
    %c0_30 = arith.constant 0 : index
    %46 = vector.load %arg3[%c0_29, %c32, %c0_30] : memref<1x96x1xf32, #tpu.memory_space<vmem>>, vector<1x32x1xf32>
    %47 = vector.shape_cast %46 : vector<1x32x1xf32> to vector<32x1xf32>
    %48 = vector.extract_strided_slice %45 {offsets = [0, 1], sizes = [32, 2], strides = [1, 1]} : vector<32x3xf32> to vector<32x2xf32>
    %49 = vector.extract_strided_slice %32 {offsets = [1, 0], sizes = [2, 256], strides = [1, 1]} : vector<3x256xf32> to vector<2x256xf32>
    %50 = vector.extract_strided_slice %48 {offsets = [0, 0], sizes = [32, 1], strides = [1, 1]} : vector<32x2xf32> to vector<32x1xf32>
    %51 = vector.extract_strided_slice %49 {offsets = [0, 0], sizes = [1, 256], strides = [1, 1]} : vector<2x256xf32> to vector<1x256xf32>
    %52 = vector.broadcast %50 : vector<32x1xf32> to vector<32x256xf32>
    %53 = vector.broadcast %51 : vector<1x256xf32> to vector<32x256xf32>
    %54 = arith.mulf %52, %53 : vector<32x256xf32>
    %55 = vector.extract_strided_slice %48 {offsets = [0, 1], sizes = [32, 1], strides = [1, 1]} : vector<32x2xf32> to vector<32x1xf32>
    %56 = vector.extract_strided_slice %49 {offsets = [1, 0], sizes = [1, 256], strides = [1, 1]} : vector<2x256xf32> to vector<1x256xf32>
    %57 = vector.broadcast %55 : vector<32x1xf32> to vector<32x256xf32>
    %58 = vector.broadcast %56 : vector<1x256xf32> to vector<32x256xf32>
    %59 = arith.mulf %57, %58 : vector<32x256xf32>
    %60 = arith.addf %54, %59 : vector<32x256xf32>
    %61 = vector.broadcast %47 : vector<32x1xf32> to vector<32x256xf32>
    %62 = arith.addf %60, %61 : vector<32x256xf32>
    %cst_31 = arith.constant 0.000000e+00 : f32
    %63 = vector.broadcast %cst_31 : f32 to vector<32x256xf32>
    %64 = arith.maximumf %62, %63 : vector<32x256xf32>
    %c1_32 = arith.constant 1 : index
    %c0_33 = arith.constant 0 : index
    %c0_34 = arith.constant 0 : index
    %65 = vector.load %arg5[%c1_32, %c0_33, %c0_34] : memref<3x6x32xf32, #tpu.memory_space<vmem>>, vector<1x6x32xf32>
    %66 = vector.shape_cast %65 : vector<1x6x32xf32> to vector<6x32xf32>
    %cst_35 = arith.constant dense<0.000000e+00> : vector<6x256xf32>
    %67 = tpu.matmul %66, %64, %cst_35 {dimension_numbers = #tpu.dot_dimension_numbers<[1], [0], [0], [1], [0, 0, 1, 1], [], []>} : vector<6x32xf32>, vector<32x256xf32>, vector<6x256xf32> -> vector<6x256xf32>
    %c1_36 = arith.constant 1 : index
    %c0_37 = arith.constant 0 : index
    %c0_38 = arith.constant 0 : index
    %68 = vector.load %arg6[%c1_36, %c0_37, %c0_38] : memref<3x6x1xf32, #tpu.memory_space<vmem>>, vector<1x6x1xf32>
    %69 = vector.shape_cast %68 : vector<1x6x1xf32> to vector<6x1xf32>
    %70 = vector.broadcast %69 : vector<6x1xf32> to vector<6x256xf32>
    %71 = arith.addf %67, %70 : vector<6x256xf32>
    %72 = vector.extract_strided_slice %71 {offsets = [0, 0], sizes = [1, 256], strides = [1, 1]} : vector<6x256xf32> to vector<1x256xf32>
    %73 = vector.extract_strided_slice %71 {offsets = [3, 0], sizes = [1, 256], strides = [1, 1]} : vector<6x256xf32> to vector<1x256xf32>
    %74 = vector.extract_strided_slice %32 {offsets = [1, 0], sizes = [2, 256], strides = [1, 1]} : vector<3x256xf32> to vector<2x256xf32>
    %75 = vector.extract_strided_slice %32 {offsets = [0, 0], sizes = [1, 256], strides = [1, 1]} : vector<3x256xf32> to vector<1x256xf32>
    %76 = arith.subf %75, %72 : vector<1x256xf32>
    %cst_39 = arith.constant -5.000000e-01 : f32
    %77 = vector.broadcast %cst_39 : f32 to vector<1x256xf32>
    %78 = arith.mulf %77, %73 : vector<1x256xf32>
    %79 = math.exp %78 : vector<1x256xf32>
    %80 = arith.mulf %76, %79 : vector<1x256xf32>
    %cst_40 = arith.constant 0.000000e+00 : f32
    %81 = vector.broadcast %cst_40 : f32 to vector<2x256xf32>
    %82 = tpu.concatenate %80, %74 in 0 : vector<1x256xf32>, vector<2x256xf32> -> vector<3x256xf32>
    %83 = tpu.concatenate %72, %74 in 0 : vector<1x256xf32>, vector<2x256xf32> -> vector<3x256xf32>
    %84 = tpu.concatenate %73, %81 in 0 : vector<1x256xf32>, vector<2x256xf32> -> vector<3x256xf32>
    %c1_41 = arith.constant 1 : index
    %c0_42 = arith.constant 0 : index
    %c0_43 = arith.constant 0 : index
    %c0_44 = arith.constant 0 : index
    %85 = vector.load %arg7[%c1_41, %c0_42, %c0_43, %c0_44] : memref<3x1x3x256xf32, #tpu.memory_space<vmem>>, vector<1x1x3x256xf32>
    %86 = vector.shape_cast %85 : vector<1x1x3x256xf32> to vector<3x256xf32>
    %87 = vector.shape_cast %82 : vector<3x256xf32> to vector<1x1x3x256xf32>
    tpu.vector_store %arg7[%c1_41, %c0_42, %c0_43, %c0_44], %87 {strides = array<i32>} : memref<3x1x3x256xf32, #tpu.memory_space<vmem>>, vector<1x1x3x256xf32>,
    %c1_45 = arith.constant 1 : index
    %c0_46 = arith.constant 0 : index
    %c0_47 = arith.constant 0 : index
    %c0_48 = arith.constant 0 : index
    %88 = vector.load %arg8[%c1_45, %c0_46, %c0_47, %c0_48] : memref<3x1x3x256xf32, #tpu.memory_space<vmem>>, vector<1x1x3x256xf32>
    %89 = vector.shape_cast %88 : vector<1x1x3x256xf32> to vector<3x256xf32>
    %90 = vector.shape_cast %83 : vector<3x256xf32> to vector<1x1x3x256xf32>
    tpu.vector_store %arg8[%c1_45, %c0_46, %c0_47, %c0_48], %90 {strides = array<i32>} : memref<3x1x3x256xf32, #tpu.memory_space<vmem>>, vector<1x1x3x256xf32>,
    %c1_49 = arith.constant 1 : index
    %c0_50 = arith.constant 0 : index
    %c0_51 = arith.constant 0 : index
    %c0_52 = arith.constant 0 : index
    %91 = vector.load %arg9[%c1_49, %c0_50, %c0_51, %c0_52] : memref<3x1x3x256xf32, #tpu.memory_space<vmem>>, vector<1x1x3x256xf32>
    %92 = vector.shape_cast %91 : vector<1x1x3x256xf32> to vector<3x256xf32>
    %93 = vector.shape_cast %84 : vector<3x256xf32> to vector<1x1x3x256xf32>
    tpu.vector_store %arg9[%c1_49, %c0_50, %c0_51, %c0_52], %93 {strides = array<i32>} : memref<3x1x3x256xf32, #tpu.memory_space<vmem>>, vector<1x1x3x256xf32>,
    %c0_53 = arith.constant 0 : index
    %c0_54 = arith.constant 0 : index
    %c0_55 = arith.constant 0 : index
    %94 = vector.load %arg4[%c0_53, %c0_54, %c0_55] : memref<3x32x3xf32, #tpu.memory_space<vmem>>, vector<1x32x3xf32>
    %95 = vector.shape_cast %94 : vector<1x32x3xf32> to vector<32x3xf32>
    %c0_56 = arith.constant 0 : index
    %c0_57 = arith.constant 0 : index
    %c0_58 = arith.constant 0 : index
    %96 = vector.load %arg3[%c0_56, %c0_57, %c0_58] : memref<1x96x1xf32, #tpu.memory_space<vmem>>, vector<1x32x1xf32>
    %97 = vector.shape_cast %96 : vector<1x32x1xf32> to vector<32x1xf32>
    %98 = vector.extract_strided_slice %95 {offsets = [0, 0], sizes = [32, 1], strides = [1, 1]} : vector<32x3xf32> to vector<32x1xf32>
    %99 = vector.extract_strided_slice %82 {offsets = [0, 0], sizes = [1, 256], strides = [1, 1]} : vector<3x256xf32> to vector<1x256xf32>
    %100 = vector.broadcast %98 : vector<32x1xf32> to vector<32x256xf32>
    %101 = vector.broadcast %99 : vector<1x256xf32> to vector<32x256xf32>
    %102 = arith.mulf %100, %101 : vector<32x256xf32>
    %103 = vector.broadcast %97 : vector<32x1xf32> to vector<32x256xf32>
    %104 = arith.addf %102, %103 : vector<32x256xf32>
    %cst_59 = arith.constant 0.000000e+00 : f32
    %105 = vector.broadcast %cst_59 : f32 to vector<32x256xf32>
    %106 = arith.maximumf %104, %105 : vector<32x256xf32>
    %c0_60 = arith.constant 0 : index
    %c0_61 = arith.constant 0 : index
    %c0_62 = arith.constant 0 : index
    %107 = vector.load %arg5[%c0_60, %c0_61, %c0_62] : memref<3x6x32xf32, #tpu.memory_space<vmem>>, vector<1x6x32xf32>
    %108 = vector.shape_cast %107 : vector<1x6x32xf32> to vector<6x32xf32>
    %cst_63 = arith.constant dense<0.000000e+00> : vector<6x256xf32>
    %109 = tpu.matmul %108, %106, %cst_63 {dimension_numbers = #tpu.dot_dimension_numbers<[1], [0], [0], [1], [0, 0, 1, 1], [], []>} : vector<6x32xf32>, vector<32x256xf32>, vector<6x256xf32> -> vector<6x256xf32>
    %c0_64 = arith.constant 0 : index
    %c0_65 = arith.constant 0 : index
    %c0_66 = arith.constant 0 : index
    %110 = vector.load %arg6[%c0_64, %c0_65, %c0_66] : memref<3x6x1xf32, #tpu.memory_space<vmem>>, vector<1x6x1xf32>
    %111 = vector.shape_cast %110 : vector<1x6x1xf32> to vector<6x1xf32>
    %112 = vector.broadcast %111 : vector<6x1xf32> to vector<6x256xf32>
    %113 = arith.addf %109, %112 : vector<6x256xf32>
    %114 = vector.extract_strided_slice %113 {offsets = [1, 0], sizes = [2, 256], strides = [1, 1]} : vector<6x256xf32> to vector<2x256xf32>
    %115 = vector.extract_strided_slice %113 {offsets = [4, 0], sizes = [2, 256], strides = [1, 1]} : vector<6x256xf32> to vector<2x256xf32>
    %116 = vector.extract_strided_slice %82 {offsets = [0, 0], sizes = [1, 256], strides = [1, 1]} : vector<3x256xf32> to vector<1x256xf32>
    %117 = vector.extract_strided_slice %82 {offsets = [1, 0], sizes = [2, 256], strides = [1, 1]} : vector<3x256xf32> to vector<2x256xf32>
    %118 = arith.subf %117, %114 : vector<2x256xf32>
    %cst_67 = arith.constant -5.000000e-01 : f32
    %119 = vector.broadcast %cst_67 : f32 to vector<2x256xf32>
    %120 = arith.mulf %119, %115 : vector<2x256xf32>
    %121 = math.exp %120 : vector<2x256xf32>
    %122 = arith.mulf %118, %121 : vector<2x256xf32>
    %cst_68 = arith.constant 0.000000e+00 : f32
    %123 = vector.broadcast %cst_68 : f32 to vector<1x256xf32>
    %124 = tpu.concatenate %116, %122 in 0 : vector<1x256xf32>, vector<2x256xf32> -> vector<3x256xf32>
    %125 = tpu.concatenate %116, %114 in 0 : vector<1x256xf32>, vector<2x256xf32> -> vector<3x256xf32>
    %126 = tpu.concatenate %123, %115 in 0 : vector<1x256xf32>, vector<2x256xf32> -> vector<3x256xf32>
    %c0_69 = arith.constant 0 : index
    %c0_70 = arith.constant 0 : index
    %c0_71 = arith.constant 0 : index
    %c0_72 = arith.constant 0 : index
    %127 = vector.load %arg7[%c0_69, %c0_70, %c0_71, %c0_72] : memref<3x1x3x256xf32, #tpu.memory_space<vmem>>, vector<1x1x3x256xf32>
    %128 = vector.shape_cast %127 : vector<1x1x3x256xf32> to vector<3x256xf32>
    %129 = vector.shape_cast %124 : vector<3x256xf32> to vector<1x1x3x256xf32>
    tpu.vector_store %arg7[%c0_69, %c0_70, %c0_71, %c0_72], %129 {strides = array<i32>} : memref<3x1x3x256xf32, #tpu.memory_space<vmem>>, vector<1x1x3x256xf32>,
    %c0_73 = arith.constant 0 : index
    %c0_74 = arith.constant 0 : index
    %c0_75 = arith.constant 0 : index
    %c0_76 = arith.constant 0 : index
    %130 = vector.load %arg8[%c0_73, %c0_74, %c0_75, %c0_76] : memref<3x1x3x256xf32, #tpu.memory_space<vmem>>, vector<1x1x3x256xf32>
    %131 = vector.shape_cast %130 : vector<1x1x3x256xf32> to vector<3x256xf32>
    %132 = vector.shape_cast %125 : vector<3x256xf32> to vector<1x1x3x256xf32>
    tpu.vector_store %arg8[%c0_73, %c0_74, %c0_75, %c0_76], %132 {strides = array<i32>} : memref<3x1x3x256xf32, #tpu.memory_space<vmem>>, vector<1x1x3x256xf32>,
    %c0_77 = arith.constant 0 : index
    %c0_78 = arith.constant 0 : index
    %c0_79 = arith.constant 0 : index
    %c0_80 = arith.constant 0 : index
    %133 = vector.load %arg9[%c0_77, %c0_78, %c0_79, %c0_80] : memref<3x1x3x256xf32, #tpu.memory_space<vmem>>, vector<1x1x3x256xf32>
    %134 = vector.shape_cast %133 : vector<1x1x3x256xf32> to vector<3x256xf32>
    %135 = vector.shape_cast %126 : vector<3x256xf32> to vector<1x1x3x256xf32>
    tpu.vector_store %arg9[%c0_77, %c0_78, %c0_79, %c0_80], %135 {strides = array<i32>} : memref<3x1x3x256xf32, #tpu.memory_space<vmem>>, vector<1x1x3x256xf32>,
    return
  }
  func.func @transform_0(%arg0: i32, %arg1: i32) -> (i32, i32, i32) {
    %c0_i32 = arith.constant 0 : i32
    %c0_i32_0 = arith.constant 0 : i32
    return %arg0, %c0_i32, %arg1 : i32, i32, i32
  }
  func.func @transform_1(%arg0: i32, %arg1: i32) -> (i32, i32, i32) {
    %c0_i32 = arith.constant 0 : i32
    %c0_i32_0 = arith.constant 0 : i32
    %c0_i32_1 = arith.constant 0 : i32
    return %arg0, %c0_i32, %c0_i32_0 : i32, i32, i32
  }
  func.func @transform_2(%arg0: i32, %arg1: i32) -> (i32, i32, i32) {
    %c0_i32 = arith.constant 0 : i32
    %c0_i32_0 = arith.constant 0 : i32
    %c0_i32_1 = arith.constant 0 : i32
    %c0_i32_2 = arith.constant 0 : i32
    return %c0_i32, %c0_i32_0, %c0_i32_1 : i32, i32, i32
  }
  func.func @transform_3(%arg0: i32, %arg1: i32) -> (i32, i32, i32) {
    %c0_i32 = arith.constant 0 : i32
    %c0_i32_0 = arith.constant 0 : i32
    %c0_i32_1 = arith.constant 0 : i32
    %c0_i32_2 = arith.constant 0 : i32
    return %c0_i32, %c0_i32_0, %c0_i32_1 : i32, i32, i32
  }
  func.func @transform_4(%arg0: i32, %arg1: i32) -> (i32, i32, i32) {
    %c0_i32 = arith.constant 0 : i32
    %c0_i32_0 = arith.constant 0 : i32
    %c0_i32_1 = arith.constant 0 : i32
    %c0_i32_2 = arith.constant 0 : i32
    return %c0_i32, %c0_i32_0, %c0_i32_1 : i32, i32, i32
  }
  func.func @transform_5(%arg0: i32, %arg1: i32) -> (i32, i32, i32, i32) {
    %c0_i32 = arith.constant 0 : i32
    %c0_i32_0 = arith.constant 0 : i32
    %c0_i32_1 = arith.constant 0 : i32
    return %c0_i32, %arg0, %c0_i32_0, %arg1 : i32, i32, i32, i32
  }
  func.func @transform_6(%arg0: i32, %arg1: i32) -> (i32, i32, i32, i32) {
    %c0_i32 = arith.constant 0 : i32
    %c0_i32_0 = arith.constant 0 : i32
    %c0_i32_1 = arith.constant 0 : i32
    return %c0_i32, %arg0, %c0_i32_0, %arg1 : i32, i32, i32, i32
  }
  func.func @transform_7(%arg0: i32, %arg1: i32) -> (i32, i32, i32, i32) {
    %c0_i32 = arith.constant 0 : i32
    %c0_i32_0 = arith.constant 0 : i32
    %c0_i32_1 = arith.constant 0 : i32
    return %c0_i32, %arg0, %c0_i32_0, %arg1 : i32, i32, i32, i32
  }
}

</mosaic_0001>

<bundles_post_ra>
// kernel: _lambda_.4
= control target key start
LH: loop header
LB: loop body
LE: loop exit
PB: predicated region body
PF: predicated region fallthrough
CT: control target
= control target key end

     0   :  { %s1420_s0 = inlined_call_operand.vmem [shape: f32[2,128], index: 0, kind: input, shape index: {}]   ;;  %s1421_s1 = inlined_call_operand.vmem [shape: f32[2,32], index: 1, kind: input, shape index: {}]   ;;  %s1422_s2 = inlined_call_operand.vmem [shape: f32[128,128], index: 2, kind: input, shape index: {}]   ;;  %s1423_s3 = inlined_call_operand.vmem [shape: f32[1,128], index: 3, kind: input, shape index: {}]   ;;  %s1424_s4 = inlined_call_operand.vmem [shape: f32[128,128], index: 4, kind: input, shape index: {}]   ;;  %s1425_s5 = inlined_call_operand.vmem [shape: f32[1,128], index: 5, kind: input, shape index: {}]   ;;  %s1426_s6 = inlined_call_operand.vmem [shape: f32[128,64], index: 6, kind: input, shape index: {}]   ;;  %s1427_s7 = inlined_call_operand.vmem [shape: f32[1,64], index: 7, kind: input, shape index: {}]   ;;  %s1428_s8 = inlined_call_operand.vmem [shape: f32[32,32], index: 8, kind: input, shape index: {}]   ;;  %s1429_s9 = inlined_call_operand.vmem [shape: f32[1,32], index: 9, kind: input, shape index: {}]   ;;  %s1430_s10 = inlined_call_operand.vmem [shape: f32[32,6], index: 10, kind: input, shape index: {}]   ;;  %s1431_s11 = inlined_call_operand.vmem [shape: f32[1,6], index: 11, kind: input, shape index: {}]   ;;  %s1432_s12 = inlined_call_operand.vmem [shape: f32[32,96], index: 12, kind: input, shape index: {}]   ;;  %s1433_s13 = inlined_call_operand.vmem [shape: f32[1,96], index: 13, kind: input, shape index: {}]   ;;  %s1434_s14 = inlined_call_operand.hbm [shape: f32[2,32], index: 14, kind: output, shape index: {0}]   ;;  %s1435_s15 = inlined_call_operand.hbm [shape: f32[2,32], index: 15, kind: output, shape index: {1}]   ;;  %s1436_s16 = inlined_call_operand.vmem [shape: f32[2,32], index: 16, kind: output, shape index: {2}]   ;;  %s1437_s17 = inlined_call_operand.vmem [shape: f32[2,3], index: 17, kind: output, shape index: {3}]   ;;  %s1438_s18 = inlined_call_operand.vmem [shape: f32[2,3], index: 18, kind: output, shape index: {4}]   ;;  %s1439_s19 = inlined_call_operand.vmem [shape: f32[2,96], index: 19, kind: output, shape index: {5}]  }
   0x1   :  { %1441 = sst [smem:[#allocation8_spill]] %s1420_s0 }
   0x2   :  { %1442 = sst [smem:[#allocation9_spill]] %s1421_s1 }
   0x3   :  { %1443 = sst [smem:[#allocation10_spill]] %s1422_s2 }
   0x4   :  { %1444 = sst [smem:[#allocation11_spill]] %s1423_s3 }
   0x5   :  { %25 = vsyncpa [#allocation3], 0  ;;  %s1445_s20 = sld [smem:[#allocation10_spill]]  ;;  %v1024_v3 = vmov 0.0|0.0   ;;  %vm1025_vm0 = vmmov 0   ;;  %v1026_v6 = vmov 0.0  }
   0x6   :  { %876 = vmatprep.subr.bf16.mxu0 %v1024_v3  ;;  %770 = vmatprep.mubr.msk.f32.mxu0 %vm1025_vm0, %v1026_v6  ;;  %v150_v10 = vld [vmem:[%s1424_s4] sm:$0xff]  ;;  %v151_v11 = vld [vmem:[%s1424_s4 + $0x8] sm:$0xff]  ;;  %v152_v12 = vld [vmem:[%s1424_s4 + $0x10] sm:$0xff] }
   0x7   :  { %900 = vmatprep.subr.bf16.mxu1 %v1024_v3  ;;  %805 = vmatprep.mubr.msk.f32.mxu1 %vm1025_vm0, %v1026_v6  ;;  %v153_v13 = vld [vmem:[%s1424_s4 + $0x18] sm:$0xff]  ;;  %v901_v15 = vpack.c.bf16 %v151_v11, %v150_v10  ;;  %v154_v19 = vld [vmem:[%s1424_s4 + $0x20] sm:$0xff]  ;;  %v155_v20 = vld [vmem:[%s1424_s4 + $0x28] sm:$0xff] }
   0x8   :  { %v904_v18 = vpack.c.bf16 %v153_v13, %v152_v12 }
   0x9   :  { %902 = vmatpush3.bf16.msra.mxu1 %v901_v15 }
   0xa   :  { %903 = vmatprep.subr.bf16.mxu1 %v1024_v3 }
   0xb   :  { %v56_v0 = vld [vmem:[%s1445_s20] sm:$0xff]  ;;  %v57_v1 = vld [vmem:[%s1445_s20 + $0x8] sm:$0xff]  ;;  %v58_v2 = vld [vmem:[%s1445_s20 + $0x10] sm:$0xff] }
   0xc   :  { %v877_v4 = vpack.c.bf16 %v57_v1, %v56_v0  ;;  %v59_v5 = vld [vmem:[%s1445_s20 + $0x18] sm:$0xff]  ;;  %v60_v8 = vld [vmem:[%s1445_s20 + $0x20] sm:$0xff]  ;;  %v61_v9 = vld [vmem:[%s1445_s20 + $0x28] sm:$0xff] }
   0xd   :  { %v880_v7 = vpack.c.bf16 %v59_v5, %v58_v2  ;;  %v883_v14 = vpack.c.bf16 %v61_v9, %v60_v8  ;;  %v62_v16 = vld [vmem:[%s1445_s20 + $0x30] sm:$0xff]  ;;  %v63_v17 = vld [vmem:[%s1445_s20 + $0x38] sm:$0xff] }
   0xe   :  { %878 = vmatpush3.bf16.msra.mxu0 %v877_v4 }
   0xf   :  { %879 = vmatprep.subr.bf16.mxu0 %v1024_v3 }
  0x12   :  { %881 = vmatpush3.bf16.msra.mxu0 %v880_v7 }
  0x13   :  { %882 = vmatprep.subr.bf16.mxu0 %v1024_v3 }
  0x14   :  { %26 = vsyncpa [#allocation5], 0  ;;  %v886_v21 = vpack.c.bf16 %v63_v17, %v62_v16  ;;  %v64_v22 = vld [vmem:[%s1445_s20 + $0x40] sm:$0xff]  ;;  %v65_v23 = vld [vmem:[%s1445_s20 + $0x48] sm:$0xff]  ;;  %905 = vmatpush3.bf16.msra.mxu1 %v904_v18  ;;  %v907_v24 = vpack.c.bf16 %v155_v20, %v154_v19  ;;  %s1446_s2 = sld [smem:[#allocation8_spill]]  ;;  %s1447_s25 = sld [smem:[#allocation11_spill]] }
  0x15   :  { %906 = vmatprep.subr.bf16.mxu1 %v1024_v3  ;;  %v156_v25 = vld [vmem:[%s1424_s4 + $0x30] sm:$0xff]  ;;  %v157_v26 = vld [vmem:[%s1424_s4 + $0x38] sm:$0xff]  ;;  %v889_v27 = vpack.c.bf16 %v65_v23, %v64_v22  ;;  %v158_v31 = vld [vmem:[%s1424_s4 + $0x40] sm:$0xff]  ;;  %s1448_s30 = sld [smem:[#allocation9_spill]]  ;;  %s1027_s21 = smov 32   ;;  %vm351_vm1 = vcmask 254976  }
  0x16   :  { %884 = vmatpush3.bf16.msra.mxu0 %v883_v14  ;;  %v66_v28 = vld [vmem:[%s1445_s20 + $0x50] sm:$0xff]  ;;  %v67_v29 = vld [vmem:[%s1445_s20 + $0x58] sm:$0xff]  ;;  %v910_v30 = vpack.c.bf16 %v157_v26, %v156_v25  ;;  %v159_v32 = vld [vmem:[%s1424_s4 + $0x48] sm:$0xff]  ;;  %s1028_s27 = smov 96   ;;  %vm370_vm2 = vcmask 261120  }
  0x17   :  { %885 = vmatprep.subr.bf16.mxu0 %v1024_v3  ;;  %v892_v33 = vpack.c.bf16 %v67_v29, %v66_v28  ;;  %v68_v34 = vld [vmem:[%s1445_s20 + $0x60] sm:$0xff]  ;;  %v69_v35 = vld [vmem:[%s1445_s20 + $0x68] sm:$0xff]  ;;  %v913_v36 = vpack.c.bf16 %v159_v32, %v158_v31  ;;  %v160_v37 = vld [vmem:[%s1424_s4 + $0x50] sm:$0xff] }
  0x18   :  { %908 = vmatpush3.bf16.msra.mxu1 %v907_v24  ;;  %v161_v38 = vld [vmem:[%s1424_s4 + $0x58] sm:$0xff]  ;;  %v895_v39 = vpack.c.bf16 %v69_v35, %v68_v34  ;;  %v70_v40 = vld [vmem:[%s1445_s20 + $0x70] sm:$0xff]  ;;  %v162_v43 = vld [vmem:[%s1424_s4 + $0x60] sm:$0xff] }
  0x19   :  { %909 = vmatprep.subr.bf16.mxu1 %v1024_v3  ;;  %v71_v41 = vld [vmem:[%s1445_s20 + $0x78] sm:$0xff]  ;;  %v916_v42 = vpack.c.bf16 %v161_v38, %v160_v37  ;;  %v163_v44 = vld [vmem:[%s1424_s4 + $0x68] sm:$0xff]  ;;  %v164_v48 = vld [vmem:[%s1424_s4 + $0x70] sm:$0xff] }
  0x1a   :  { %887 = vmatpush3.bf16.msra.mxu0 %v886_v21  ;;  %v898_v45 = vpack.c.bf16 %v71_v41, %v70_v40  ;;  %v919_v46 = vpack.c.bf16 %v163_v44, %v162_v43  ;;  %v55_v47 = vld [vmem:[%s1446_s2] sm:$0x3]  ;;  %v165_v49 = vld [vmem:[%s1424_s4 + $0x78] sm:$0xff]  ;;  %v245_v52 = vld [vmem:[%s1426_s6 + $0x8] sm:$0xff] }
  0x1b   :  { %888 = vmatprep.subr.bf16.mxu0 %v1024_v3  ;;  %v922_v50 = vpack.c.bf16 %v165_v49, %v164_v48  ;;  %v244_v51 = vld [vmem:[%s1426_s6] sm:$0xff]  ;;  %v246_v53 = vld [vmem:[%s1426_s6 + $0x10] sm:$0xff]  ;;  %v247_v55 = vld [vmem:[%s1426_s6 + $0x18] sm:$0xff] }
  0x1c   :  { %911 = vmatpush3.bf16.msra.mxu1 %v910_v30  ;;  %v925_v54 = vpack.c.bf16 %v245_v52, %v244_v51  ;;  %v928_v56 = vpack.c.bf16 %v247_v55, %v246_v53  ;;  %v248_v57 = vld [vmem:[%s1426_s6 + $0x20] sm:$0xff]  ;;  %v249_v58 = vld [vmem:[%s1426_s6 + $0x28] sm:$0xff]  ;;  %v250_v60 = vld [vmem:[%s1426_s6 + $0x30] sm:$0xff] }
  0x1d   :  { %912 = vmatprep.subr.bf16.mxu1 %v1024_v3  ;;  %v931_v59 = vpack.c.bf16 %v249_v58, %v248_v57  ;;  %v251_v61 = vld [vmem:[%s1426_s6 + $0x38] sm:$0xff]  ;;  %v252_v63 = vld [vmem:[%s1426_s6 + $0x40] sm:$0xff]  ;;  %v253_v0 = vld [vmem:[%s1426_s6 + $0x48] sm:$0xff] }
  0x1e   :  { %890 = vmatpush3.bf16.msra.mxu0 %v889_v27  ;;  %v934_v62 = vpack.c.bf16 %v251_v61, %v250_v60  ;;  %v937_v1 = vpack.c.bf16 %v253_v0, %v252_v63  ;;  %v254_v2 = vld [vmem:[%s1426_s6 + $0x50] sm:$0xff]  ;;  %v255_v4 = vld [vmem:[%s1426_s6 + $0x58] sm:$0xff]  ;;  %v256_v7 = vld [vmem:[%s1426_s6 + $0x60] sm:$0xff] }
  0x1f   :  { %891 = vmatprep.subr.bf16.mxu0 %v1024_v3  ;;  %v940_v5 = vpack.c.bf16 %v255_v4, %v254_v2  ;;  %v257_v8 = vld [vmem:[%s1426_s6 + $0x68] sm:$0xff]  ;;  %v663_v10 = vld [vmem:[%s1447_s25] ss:$0 sm:$0xff]  ;;  %v258_v15 = vld [vmem:[%s1426_s6 + $0x70] sm:$0xff] }
  0x20   :  { %914 = vmatpush3.bf16.msra.mxu1 %v913_v36  ;;  %v943_v9 = vpack.c.bf16 %v257_v8, %v256_v7  ;;  %v259_v16 = vld [vmem:[%s1426_s6 + $0x78] sm:$0xff]  ;;  %v340_v18 = vld [vmem:[%s1448_s30] sm:$0x3]  ;;  %v360_v25 = vld [vmem:[%s1428_s8 + $0x8] sm:$0xff] }
  0x21   :  { %915 = vmatprep.subr.bf16.mxu1 %v1024_v3  ;;  %v946_v17 = vpack.c.bf16 %v259_v16, %v258_v15  ;;  %342 = vrot.lane.b32.xlu0 %v340_v18, %s1027_s21  ;;  %v664_v19 = vld [vmem:[%s1425_s5] ss:$0 sm:$0xff]  ;;  %v361_v26 = vld [vmem:[%s1428_s8 + $0x10] sm:$0xff]  ;;  %v362_v28 = vld [vmem:[%s1428_s8 + $0x18] sm:$0xff] }
  0x22   :  { %893 = vmatpush3.bf16.msra.mxu0 %v892_v33  ;;  %v359_v24 = vld [vmem:[%s1428_s8] sm:$0xff]  ;;  %v952_v29 = vpack.c.bf16 %v362_v28, %v361_v26  ;;  %v446_v41 = vld [vmem:[%s1430_s10 + $0x8] sm:$0xff]  ;;  %v539_v57 = vld [vmem:[%s1432_s12 + $0x18] sm:$0xff] }
  0x23   :  { %894 = vmatprep.subr.bf16.mxu0 %v1024_v3  ;;  %v949_v27 = vpack.c.bf16 %v360_v25, %v359_v24  ;;  %v665_v30 = vld [vmem:[%s1427_s7] ss:$0 sm:$0xff] }
  0x24   :  { %917 = vmatpush3.bf16.msra.mxu1 %v916_v42  ;;  %v445_v40 = vld [vmem:[%s1430_s10] sm:$0xff] }
  0x25   :  { %918 = vmatprep.subr.bf16.mxu1 %v1024_v3  ;;  %v955_v43 = vpack.c.bf16 %v446_v41, %v445_v40  ;;  %v666_v48 = vld [vmem:[%s1429_s9] ss:$0 sm:$0xff]  ;;  %s1029_s9 = smov [#allocation2]  }
  0x26   :  { %896 = vmatpush3.bf16.msra.mxu0 %v895_v39  ;;  %v536_v49 = vld [vmem:[%s1432_s12] sm:$0xff]  ;;  %s625_s26 = sshll.u32 %s1029_s9, 4  ;;  %s626_s26 = int_to_ptr.vmem [resolvable:$true] %s625_s26 }
  0x27   :  { %897 = vmatprep.subr.bf16.mxu0 %v1024_v3  ;;  %s976_s8 = scalar_lea.vmem %s626_s26, 32  ;;  %p981_p1 = scmp.lt.s32.totalorder %s626_s26, %s626_s26 }
  0x28   :  { %920 = vmatpush3.bf16.msra.mxu1 %v919_v46  ;;  %v448_v46 = vld [vmem:[%s1430_s10 + $0x18] sm:$0xff]  ;;  %p977_p0 = scmp.ne.s32.totalorder %s626_s26, %s976_s8  ;;  %p982_p2 = scmp.lt.s32.totalorder %s976_s8, %s976_s8 }
  0x29   :  { %921 = vmatprep.subr.bf16.mxu1 %v1024_v3 }
  0x2a   :  { %899 = vmatpush3.bf16.msra.mxu0 %v898_v45  ;;  %v447_v45 = vld [vmem:[%s1430_s10 + $0x10] sm:$0xff]  ;;  %p983_p3 = por %p982_p2, %p981_p1 }
  0x2b   :  { %924 = vmatprep.subr.bf16.mxu0 %v1024_v3 }
  0x2c   :  { %923 = vmatpush3.bf16.msra.mxu1 %v922_v50  ;;  %v537_v50 = vld [vmem:[%s1432_s12 + $0x8] sm:$0xff]  ;;  %p984_p4 = pnand %p983_p3, %p977_p0 }
  0x2d   :  { %771 = vmatmul.mubr.f32.vlgmr.msra.gmra.mrb[0].mxu0 %v55_v47  ;;  %948 = vmatprep.subr.bf16.mxu1 %v1024_v3  ;;  %v958_v47 = vpack.c.bf16 %v448_v46, %v447_v45 }
  0x2e   :  { %840 = vmatprep.mubr.msk.f32.mxu0 %vm1025_vm0, %v1026_v6  ;;  %926 = vmatpush3.bf16.msra.mxu0 %v925_v54  ;;  %v961_v54 = vpack.c.bf16 %v537_v50, %v536_v49 }
  0x2f   :  { %927 = vmatprep.subr.bf16.mxu0 %v1024_v3 }
  0x32   :  { %929 = vmatpush3.bf16.msra.mxu0 %v928_v56  ;;  %v538_v56 = vld [vmem:[%s1432_s12 + $0x10] sm:$0xff] }
  0x33   :  { %930 = vmatprep.subr.bf16.mxu0 %v1024_v3  ;;  %v964_v58 = vpack.c.bf16 %v539_v57, %v538_v56 }
  0x36   :  { %932 = vmatpush3.bf16.msra.mxu0 %v931_v59 }
  0x37   :  { %933 = vmatprep.subr.bf16.mxu0 %v1024_v3 }
  0x3a   :  { %935 = vmatpush3.bf16.msra.mxu0 %v934_v62 }
  0x3b   :  { %936 = vmatprep.subr.bf16.mxu0 %v1024_v3 }
  0x3e   :  { %938 = vmatpush3.bf16.msra.mxu0 %v937_v1 }
  0x3f   :  { %939 = vmatprep.subr.bf16.mxu0 %v1024_v3 }
  0x42   :  { %941 = vmatpush3.bf16.msra.mxu0 %v940_v5 }
  0x43   :  { %942 = vmatprep.subr.bf16.mxu0 %v1024_v3 }
  0x46   :  { %944 = vmatpush3.bf16.msra.mxu0 %v943_v9 }
  0x47   :  { %945 = vmatprep.subr.bf16.mxu0 %v1024_v3 }
  0x4a   :  { %947 = vmatpush3.bf16.msra.mxu0 %v946_v17 }
  0x93   :  { %v343_v36 = vpop.permute.xlu0 %342 }
 0x100   :  { %v145_v11 = vpop.f32.mrb[0].mxu0 }
 0x101   :  { %v146_v12 = vadd.f32 %v663_v10, %v145_v11  ;;  %v772_v13 = vpop.f32.mrb[1].mxu0 }
 0x103   :  { %v149_v14 = vmax.f32 %v146_v12, 0.0 }
 0x105   :  { %806 = vmatmul.mubr.f32.vlgmr.msra.gmra.mrb[0].mxu1 %v149_v14 }
 0x106   :  { %851 = vmatprep.mubr.msk.f32.mxu1 %vm1025_vm0, %v1026_v6  ;;  %950 = vmatpush3.bf16.msra.mxu1 %v949_v27 }
 0x107   :  { %951 = vmatprep.subr.bf16.mxu1 %v1024_v3 }
 0x10a   :  { %953 = vmatpush3.bf16.msra.mxu1 %v952_v29 }
 0x10b   :  { %954 = vmatprep.subr.bf16.mxu1 %v1024_v3 }
 0x1d8   :  { %v239_v20 = vpop.f32.mrb[0].mxu1 }
 0x1d9   :  { %v240_v21 = vadd.f32 %v664_v19, %v239_v20  ;;  %v807_v22 = vpop.f32.mrb[1].mxu1 }
 0x1db   :  { %v243_v23 = vmax.f32 %v240_v21, 0.0 }
 0x1dd   :  { %841 = vmatmul.mubr.f32.vlgmr.msra.gmra.mrb[2].mxu0 %v243_v23 }
 0x2b0   :  { %v333_v31 = vpop.f32.mrb[2].mxu0 }
 0x2b1   :  { %v334_v32 = vadd.f32 %v665_v30, %v333_v31  ;;  %v842_v33 = vpop.f32.mrb[3].mxu0 }
 0x2b3   :  { %v337_v34 = vmul.f32 0.5, %v334_v32  ;;  %354 = vrot.lane.b32.xlu1 %v334_v32, %s1028_s27  ;;  %352 = vst.msk [vmem:[#allocation2] sm:$0x3] %vm351_vm1, %v334_v32 }
 0x2b5   :  { %v338_v35 = vmul.f32 1.442695, %v337_v34 }
 0x2b7   :  { %974 = vpow2.f32 %v338_v35 }
 0x2c1   :  { %v975_v37 = vpop.eup %974 }
 0x2c2   :  { %v345_v38 = vmul.f32 %v975_v37, %v343_v36 }
 0x2c4   :  { %347 = vrot.lane.b32.xlu0 %v345_v38, %s1028_s27  ;;  %s1030_s27 = smov [#allocation4]  }
 0x2c5   :  { %s635_s7 = sshll.u32 %s1030_s27, 4  ;;  %s636_s7 = int_to_ptr.vmem [resolvable:$true] %s635_s7 }
 0x325   :  { %v355_v39 = vpop.permute.xlu1 %354 }
 0x326   :  { %357 = vst.msk [vmem:[#allocation4] sm:$0x3] %vm351_vm1, %v355_v39 }
 0x336   :  { %v348_v42 = vpop.permute.xlu0 %347 }
 0x337   :  { %v350_v44 = vadd.f32 %v348_v42, %v334_v32 }
 0x339   :  { %358 = vst.msk [vmem:[%s1436_s16] sm:$0x3] %vm351_vm1, %v350_v44  ;;  %852 = vmatmul.mubr.msk.f32.vlgmr.msra.gmra.mrb[2].mxu1 %vm370_vm2, %v350_v44 }
 0x33a   :  { %956 = vmatpush3.bf16.msra.mxu1 %v955_v43  ;;  %862 = vmatprep.mubr.msk.f32.mxu1 %vm1025_vm0, %v1026_v6 }
 0x33b   :  { %957 = vmatprep.subr.bf16.mxu1 %v1024_v3 }
 0x33e   :  { %959 = vmatpush3.bf16.msra.mxu1 %v958_v47 }
 0x33f   :  { %960 = vmatprep.subr.bf16.mxu1 %v1024_v3 }
 0x40c   :  { %v440_v51 = vpop.f32.mrb[2].mxu1 }
 0x40d   :  { %v441_v52 = vadd.f32 %v666_v48, %v440_v51  ;;  %v853_v53 = vpop.f32.mrb[3].mxu1 }
 0x40f   :  { %v444_v55 = vmax.f32 %v441_v52, 0.0 }
 0x411   :  { %863 = vmatmul.mubr.msk.f32.vlgmr.msra.gmra.mrb[4].mxu1 %vm370_vm2, %v444_v55 }
 0x412   :  { %962 = vmatpush3.bf16.msra.mxu1 %v961_v54  ;;  %873 = vmatprep.mubr.msk.f32.mxu1 %vm1025_vm0, %v1026_v6 }
 0x413   :  { %963 = vmatprep.subr.bf16.mxu1 %v1024_v3 }
 0x416   :  { %965 = vmatpush3.bf16.msra.mxu1 %v964_v58 }
 0x419   :  { %874 = vmatmul.mubr.msk.f32.vlgmr.msra.gmra.mrb[6].mxu1 %vm370_vm2, %v350_v44 }
 0x41a   :  { %987 = shalt.err (!%p984_p4)
}
 0x41b   :  { %s988_s29 = scalar_lea.hbm %s1434_s14, 32 }
 0x41c   :  { %p989_p5 = scmp.ne.s32.totalorder %s1434_s14, %s988_s29  ;;  %p992_p6 = scmp.lt.u32.totalorder %s988_s29, %s1434_s14 }
 0x41e   :  { %p994_p7 = pnand %p992_p6, %p989_p5 }
 0x420   :  { %997 = shalt.err (!%p994_p7)
}
 0x421   :  { %628 = dma.vmem_to_hbm [thread:$0]  %s626_s26, 32, %s1434_s14, [#allocation3]  }
 0x422   :  { %s998_s16 = scalar_lea.vmem %s636_s7, 32  ;;  %p1003_p9 = scmp.lt.s32.totalorder %s636_s7, %s636_s7 }
 0x423   :  { %p999_p8 = scmp.ne.s32.totalorder %s636_s7, %s998_s16  ;;  %p1004_p10 = scmp.lt.s32.totalorder %s998_s16, %s998_s16 }
 0x425   :  { %p1005_p11 = por %p1004_p10, %p1003_p9 }
 0x427   :  { %p1006_p12 = pnand %p1005_p11, %p999_p8 }
 0x429   :  { %1009 = shalt.err (!%p1006_p12)
}
 0x42a   :  { %s1010_s2 = scalar_lea.hbm %s1435_s15, 32 }
 0x42b   :  { %p1011_p13 = scmp.ne.s32.totalorder %s1435_s15, %s1010_s2  ;;  %p1014_p0 = scmp.lt.u32.totalorder %s1010_s2, %s1435_s15 }
 0x42d   :  { %p1016_p1 = pnand %p1014_p0, %p1011_p13 }
 0x42f   :  { %1019 = shalt.err (!%p1016_p1)
}
 0x430   :  { %638 = dma.vmem_to_hbm [thread:$0]  %s636_s7, 32, %s1435_s15, [#allocation5]   ;;  %v668_v3 = vld [vmem:[%s1431_s11] ss:$0 sm:$0xff]  ;;  %vm529_vm3 = vcmask 17408   ;;  %vm617_vm4 = vcmask 779264  }
 0x431   :  { %s1031_s26 = smov 125   ;;  %v670_v61 = vld [vmem:[%s1433_s13] ss:$0 sm:$0xff] }
 0x4e4   :  { %v525_v6 = vpop.f32.mrb[4].mxu1 }
 0x4e5   :  { %v526_v59 = vadd.f32 %v668_v3, %v525_v6  ;;  %v864_v60 = vpop.f32.mrb[5].mxu1 }
 0x4e7   :  { %532 = vrot.lane.b32.xlu1 %v526_v59, %s1031_s26  ;;  %530 = vst.msk [vmem:[%s1437_s17] sm:$0x3] %vm529_vm3, %v526_v59 }
 0x4ec   :  { %v613_v62 = vpop.f32.mrb[6].mxu1 }
 0x4ed   :  { %v614_v63 = vadd.f32 %v670_v61, %v613_v62  ;;  %v875_v0 = vpop.f32.mrb[7].mxu1 }
 0x4ef   :  { %618 = vst.msk [vmem:[%s1439_s19] sm:$0x3] %vm617_vm4, %v614_v63 }
 0x559   :  { %v533_v1 = vpop.permute.xlu1 %532 }
 0x55a   :  { %535 = vst.msk [vmem:[%s1438_s18] sm:$0x3] %vm529_vm3, %v533_v1 }
 0x55b   :  { %1020 = dma.done.wait [#allocation3], 32  }
 0x55c   :  { %1021 = vsyncadd [#allocation3], 4294967264 }
 0x55d   :  { %1022 = dma.done.wait [#allocation5], 32  }
 0x55e   :  { %1023 = vsyncadd [#allocation5], 4294967264 }
 0x55f   :  { %661 = vsyncpa [#allocation3], 1 }
 0x560   :  { %662 = vsyncpa [#allocation5], 1 }

// kernel: _lambda_.3
= control target key start
LH: loop header
LB: loop body
LE: loop exit
PB: predicated region body
PF: predicated region fallthrough
CT: control target
= control target key end

     0   :  { %s1476_s24 = smov 0   ;;  %s1478_s25 = smov 0   ;;  %s1710_s0 = inlined_call_operand.vmem [shape: f32[2,3,256], index: 0, kind: input, shape index: {}]   ;;  %s1711_s1 = inlined_call_operand.vmem [shape: f32[32,3], index: 1, kind: input, shape index: {}]   ;;  %s1712_s2 = inlined_call_operand.vmem [shape: f32[32,1], index: 2, kind: input, shape index: {}]   ;;  %s1713_s3 = inlined_call_operand.vmem [shape: bf16[64,32], index: 3, kind: input, shape index: {}]   ;;  %s1714_s4 = inlined_call_operand.vmem [shape: f32[64,1], index: 4, kind: input, shape index: {}]   ;;  %s1715_s5 = inlined_call_operand.vmem [shape: bf16[128,64], index: 5, kind: input, shape index: {}]   ;;  %s1716_s6 = inlined_call_operand.vmem [shape: f32[128,1], index: 6, kind: input, shape index: {}]   ;;  %s1717_s7 = inlined_call_operand.vmem [shape: f32[2,128,1], index: 7, kind: output, shape index: {}]  }
   0x1   :  { %s1480_s26 = smov 0  }
   0x2 LB: > { %s29_s27 = sadd.s32 1, %s1427_s25  ;;  %p1321_p0 = scmp.ge.s32.totalorder %s1431_s26, 1  ;;  %s1431_s26 = sphi %s1480_s26, %s17_s26   ;;  %s1427_s25 = sphi %s1478_s25, %s1719_s25   ;;  %s1423_s24 = sphi %s1476_s24, %s1718_s24  }
   0x3   : > { %p31_p1 = scmp.ge.s32.totalorder %s29_s27, 2  ;;  %p256_p2 = scmp.lt.s32.totalorder %s1431_s26, 3 }
   0x5   : > { %s1721_s27 = smov (%p31_p1, %s29_s27), 0  ;;  %p257_p3 = pnand %p1321_p0, %p256_p2 }
   0x6   : > { %v309_v0 = vld [vmem:[%s1711_s1] sm:$0xff] (!%p257_p3)  ;;  %v1433_v1 = vmov (!%p257_p3), 2   ;;  %v1434_v2 = vmov (!%p257_p3), 1   ;;  %v311_v3 = vld [vmem:[%s1711_s1 + $0x10] sm:$0xff] (!%p257_p3)  ;;  %v310_v4 = vld [vmem:[%s1711_s1 + $0x8] sm:$0xff] (!%p257_p3)  ;;  %v1435_v5 = vmov (!%p257_p3), 0   ;;  %v338_v39 = vlaneseq (!%p257_p3) }
   0x7   : > { %260 = sbr.rel (%p257_p3) target bundleno = 840 (0x348), region = 48  ;;  %1390 = vset.pattern.permute.xlu0 (!%p257_p3), %v1433_v1  ;;  %1389 = vset.pattern.permute.xlu1 (!%p257_p3), %v1434_v2  ;;  %v312_v6 = vld [vmem:[%s1711_s1 + $0x18] sm:$0xff] (!%p257_p3)  ;;  %v314_v7 = vld [vmem:[%s1712_s2 + $0x8] sm:$0xff] (!%p257_p3)  ;;  %v508_v8 = vld [vmem:[%s1714_s4] sm:$0xff] (!%p257_p3)  ;;  %p293_p4 = scmp.lt.s32.totalorder (!%p257_p3), %s1423_s24, 1  ;;  %vm580_vm0 = vcmask (!%p257_p3), 261120  }
   0x8   : > { %415 = vperm.xlu0 (!%p257_p3), %1390, %v309_v0   ;;  %365 = vperm.xlu1 (!%p257_p3), %1389, %v309_v0   ;;  %v510_v9 = vld [vmem:[%s1714_s4 + $0x10] sm:$0xff] (!%p257_p3)  ;;  %v512_v10 = vld [vmem:[%s1714_s4 + $0x20] sm:$0xff] (!%p257_p3)  ;;  %v316_v15 = vld [vmem:[%s1712_s2 + $0x18] sm:$0xff] (!%p257_p3)  ;;  %v339_v40 = vshrl.u32 (!%p257_p3), %v338_v39, 7  ;;  %vm842_vm1 = vcmask (!%p257_p3), 523264   ;;  %vm1231_vm2 = vcmask (!%p257_p3), 7168  }
   0x9   : > { %625 = vmatprep.mubr.bf16.mxu0 (!%p257_p3), %v1435_v5  ;;  %919 = vmatprep.mubr.bf16.mxu1 (!%p257_p3), %v1435_v5  ;;  %v313_v11 = vld [vmem:[%s1712_s2] sm:$0xff] (!%p257_p3)  ;;  %v514_v12 = vld [vmem:[%s1714_s4 + $0x30] sm:$0xff] (!%p257_p3)  ;;  %v509_v17 = vld [vmem:[%s1714_s4 + $0x8] sm:$0xff] (!%p257_p3) }
   0xa   : > { %v315_v13 = vld [vmem:[%s1712_s2 + $0x10] sm:$0xff] (!%p257_p3)  ;;  %v698_v14 = vld [vmem:[%s1716_s6] sm:$0xff] (!%p257_p3)  ;;  %v511_v19 = vld [vmem:[%s1714_s4 + $0x18] sm:$0xff] (!%p257_p3)  ;;  %v340_v43 = vsub.s32 (!%p257_p3), 0, %v339_v40  ;;  %v344_v44 = vsub.s32 (!%p257_p3), 4, %v339_v40  ;;  %v382_v45 = vsub.s32 (!%p257_p3), 1, %v339_v40 }
   0xb   : > { %v700_v16 = vld [vmem:[%s1716_s6 + $0x10] sm:$0xff] (!%p257_p3)  ;;  %v702_v18 = vld [vmem:[%s1716_s6 + $0x20] sm:$0xff] (!%p257_p3)  ;;  %v513_v21 = vld [vmem:[%s1714_s4 + $0x28] sm:$0xff] (!%p257_p3)  ;;  %v386_v46 = vsub.s32 (!%p257_p3), 5, %v339_v40  ;;  %v432_v49 = vsub.s32 (!%p257_p3), 2, %v339_v40  ;;  %v436_v50 = vsub.s32 (!%p257_p3), 6, %v339_v40 }
   0xc   : > { %423 = vperm.xlu0 (!%p257_p3), %1390, %v311_v3   ;;  %369 = vperm.xlu1 (!%p257_p3), %1389, %v310_v4   ;;  %v704_v20 = vld [vmem:[%s1716_s6 + $0x30] sm:$0xff] (!%p257_p3)  ;;  %v706_v22 = vld [vmem:[%s1716_s6 + $0x40] sm:$0xff] (!%p257_p3)  ;;  %v515_v23 = vld [vmem:[%s1714_s4 + $0x38] sm:$0xff] (!%p257_p3) }
   0xd   : > { %v708_v24 = vld [vmem:[%s1716_s6 + $0x50] sm:$0xff] (!%p257_p3)  ;;  %v699_v25 = vld [vmem:[%s1716_s6 + $0x8] sm:$0xff] (!%p257_p3)  ;;  %v710_v26 = vld [vmem:[%s1716_s6 + $0x60] sm:$0xff] (!%p257_p3) }
   0xe   : > { %v701_v27 = vld [vmem:[%s1716_s6 + $0x18] sm:$0xff]  ;;  %v712_v28 = vld [vmem:[%s1716_s6 + $0x70] sm:$0xff]  ;;  %v703_v29 = vld [vmem:[%s1716_s6 + $0x28] sm:$0xff]  ;;  %s1723_s24 = smov (!%p293_p4, %s1423_s24), 1 }
   0xf   : > { %v705_v30 = vld [vmem:[%s1716_s6 + $0x38] sm:$0xff]  ;;  %v707_v31 = vld [vmem:[%s1716_s6 + $0x48] sm:$0xff]  ;;  %s1352_s12 = sshll.u32 %s1723_s24, 3  ;;  %s1353_s21 = sshll.u32 %s1723_s24, 7 }
  0x10   : > { %1394 = vset.pattern.permute.xlu0 %v1435_v5  ;;  %1391 = vset.pattern.permute.xlu1 %v1433_v1  ;;  %v709_v32 = vld [vmem:[%s1716_s6 + $0x58] sm:$0xff]  ;;  %v711_v33 = vld [vmem:[%s1716_s6 + $0x68] sm:$0xff]  ;;  %s300_s15 = scalar_lea.vmem %s1710_s0, %s1352_s12  ;;  %s1667_s28 = scalar_lea.vmem %s1717_s7, %s1353_s21 }
  0x11   : > { %319 = vperm.xlu0 %1394, %v309_v0   ;;  %419 = vperm.xlu1 %1391, %v310_v4   ;;  %v713_v34 = vld [vmem:[%s1716_s6 + $0x78] sm:$0xff]  ;;  %v308_v47 = vld [vmem:[%s300_s15] sm:$0x77] }
  0x12   : > { %v341_v51 = vrot.slane %v308_v47, %v340_v43  ;;  %v345_v52 = vrot.slane %v308_v47, %v344_v44  ;;  %v383_v54 = vrot.slane %v308_v47, %v382_v45  ;;  %v387_v55 = vrot.slane %v308_v47, %v386_v46 }
  0x13   : > { %v433_v56 = vrot.slane %v308_v47, %v432_v49  ;;  %v437_v57 = vrot.slane %v308_v47, %v436_v50 }
  0x14   : > { %v351_v58 = vrot.slane %v341_v51, %v340_v43  ;;  %v355_v59 = vrot.slane %v345_v52, %v340_v43  ;;  %v393_v61 = vrot.slane %v383_v54, %v382_v45  ;;  %v397_v62 = vrot.slane %v387_v55, %v382_v45 }
  0x15   : > { %324 = vperm.xlu0 %1394, %v310_v4   ;;  %1392 = vset.pattern.permute.xlu1 %v1435_v5 }
  0x16   : > { %329 = vperm.xlu1 %1392, %v311_v3  }
  0x19   : > { %334 = vperm.xlu0 %1394, %v312_v6  }
  0x1a   : > { %1393 = vset.pattern.permute.xlu1 %v1434_v2  ;;  %v443_v2 = vrot.slane %v433_v56, %v432_v49 }
  0x1b   : > { %373 = vperm.xlu1 %1393, %v311_v3   ;;  %v447_v3 = vrot.slane %v437_v57, %v432_v49 }
  0x1d   : > { %471 = vperm.xlu0 %1394, %v314_v7  }
  0x1f   : > { %377 = vperm.xlu1 %1393, %v312_v6  }
  0x21   : > { %522 = vperm.xlu0 %1394, %v508_v8  }
  0x23   : > { %1395 = vset.pattern.permute.xlu1 %v1433_v1 }
  0x24   : > { %427 = vperm.xlu1 %1395, %v312_v6  }
  0x25   : > { %532 = vperm.xlu0 %1394, %v510_v9  }
  0x28   : > { %1396 = vset.pattern.permute.xlu1 %v1435_v5 }
  0x29   : > { %542 = vperm.xlu0 %1394, %v512_v10   ;;  %466 = vperm.xlu1 %1396, %v313_v11  }
  0x2d   : > { %552 = vperm.xlu0 %1394, %v514_v12   ;;  %476 = vperm.xlu1 %1396, %v315_v13  }
  0x31   : > { %724 = vperm.xlu0 %1394, %v698_v14   ;;  %481 = vperm.xlu1 %1396, %v316_v15  }
  0x35   : > { %734 = vperm.xlu0 %1394, %v700_v16   ;;  %527 = vperm.xlu1 %1396, %v509_v17  }
  0x39   : > { %744 = vperm.xlu0 %1394, %v702_v18   ;;  %537 = vperm.xlu1 %1396, %v511_v19  }
  0x3d   : > { %754 = vperm.xlu0 %1394, %v704_v20   ;;  %547 = vperm.xlu1 %1396, %v513_v21  }
  0x41   : > { %764 = vperm.xlu0 %1394, %v706_v22   ;;  %557 = vperm.xlu1 %1396, %v515_v23  }
  0x45   : > { %774 = vperm.xlu0 %1394, %v708_v24   ;;  %729 = vperm.xlu1 %1396, %v699_v25  }
  0x49   : > { %784 = vperm.xlu0 %1394, %v710_v26   ;;  %739 = vperm.xlu1 %1396, %v701_v27  }
  0x4d   : > { %794 = vperm.xlu0 %1394, %v712_v28   ;;  %749 = vperm.xlu1 %1396, %v703_v29  }
  0x51   : > { %759 = vperm.xlu1 %1396, %v705_v30  }
  0x55   : > { %769 = vperm.xlu1 %1396, %v707_v31  }
  0x59   : > { %779 = vperm.xlu1 %1396, %v709_v32  }
  0x5d   : > { %789 = vperm.xlu1 %1396, %v711_v33  }
  0x61   : > { %799 = vperm.xlu1 %1396, %v713_v34  }
  0x87   : > { %v366_v35 = vpop.permute.xlu1 %365  ;;  %v416_v36 = vpop.permute.xlu0 %415 }
  0x88   : > { %v398_v12 = vmul.f32 %v393_v61, %v366_v35  ;;  %v399_v13 = vmul.f32 %v397_v62, %v366_v35  ;;  %v448_v16 = vmul.f32 %v443_v2, %v416_v36  ;;  %v449_v17 = vmul.f32 %v447_v3, %v416_v36 }
  0x8b   : > { %v370_v37 = vpop.permute.xlu1 %369  ;;  %v1601_v38 = vpop.permute.xlu0 %423 }
  0x8c   : > { %v400_v4 = vmul.f32 %v393_v61, %v370_v37  ;;  %v401_v6 = vmul.f32 %v397_v62, %v370_v37  ;;  %v453_v43 = vmul.f32 %v447_v3, %v1601_v38 }
  0x90   : > { %v420_v41 = vpop.permute.xlu1 %419  ;;  %v320_v42 = vpop.permute.xlu0 %319 }
  0x91   : > { %v356_v8 = vmul.f32 %v351_v58, %v320_v42  ;;  %v357_v9 = vmul.f32 %v355_v59, %v320_v42  ;;  %v450_v14 = vmul.f32 %v443_v2, %v420_v41  ;;  %v451_v15 = vmul.f32 %v447_v3, %v420_v41 }
  0x92   : > { %v452_v42 = vmul.f32 %v443_v2, %v1601_v38 }
  0x93   : > { %v406_v18 = vadd.f32 %v398_v12, %v356_v8  ;;  %v407_v19 = vadd.f32 %v399_v13, %v357_v9  ;;  %v1399_v8 = vld [vmem:[%s1713_s3 + $0x10] sm:$0xff]   ;;  %v1400_v9 = vld [vmem:[%s1713_s3 + $0x18] sm:$0xff]  }
  0x94   : > { %v325_v53 = vpop.permute.xlu0 %324 }
  0x95   : > { %v330_v48 = vpop.permute.xlu1 %329  ;;  %v358_v63 = vmul.f32 %v351_v58, %v325_v53  ;;  %v359_v0 = vmul.f32 %v355_v59, %v325_v53  ;;  %v456_v30 = vadd.f32 %v448_v16, %v406_v18  ;;  %v457_v31 = vadd.f32 %v449_v17, %v407_v19 }
  0x96   : > { %v360_v26 = vmul.f32 %v351_v58, %v330_v48  ;;  %v361_v27 = vmul.f32 %v355_v59, %v330_v48 }
  0x97   : > { %v408_v10 = vadd.f32 %v400_v4, %v358_v63  ;;  %v409_v11 = vadd.f32 %v401_v6, %v359_v0  ;;  %v1397_v6 = vld [vmem:[%s1713_s3] sm:$0xff]  }
  0x98   : > { %v335_v1 = vpop.permute.xlu0 %334 }
  0x99   : > { %v458_v24 = vadd.f32 %v450_v14, %v408_v10  ;;  %v459_v25 = vadd.f32 %v451_v15, %v409_v11  ;;  %v362_v32 = vmul.f32 %v351_v58, %v335_v1  ;;  %v363_v33 = vmul.f32 %v355_v59, %v335_v1 }
  0x9a   : > { %v374_v60 = vpop.permute.xlu1 %373 }
  0x9b   : > { %v402_v22 = vmul.f32 %v393_v61, %v374_v60  ;;  %v403_v23 = vmul.f32 %v397_v62, %v374_v60 }
  0x9c   : > { %v472_v20 = vpop.permute.xlu0 %471 }
  0x9d   : > { %v486_v28 = vadd.f32 %v472_v20, %v458_v24  ;;  %v487_v29 = vadd.f32 %v472_v20, %v459_v25  ;;  %v410_v34 = vadd.f32 %v402_v22, %v360_v26  ;;  %v411_v35 = vadd.f32 %v403_v23, %v361_v27 }
  0x9e   : > { %v378_v7 = vpop.permute.xlu1 %377 }
  0x9f   : > { %v404_v36 = vmul.f32 %v393_v61, %v378_v7  ;;  %v405_v39 = vmul.f32 %v397_v62, %v378_v7  ;;  %v494_v44 = vmax.f32 %v486_v28, 0.0  ;;  %v495_v45 = vmax.f32 %v487_v29, 0.0  ;;  %v1398_v7 = vld [vmem:[%s1713_s3 + $0x8] sm:$0xff]  }
  0xa0   : > { %v460_v51 = vadd.f32 %v452_v42, %v410_v34  ;;  %v461_v52 = vadd.f32 %v453_v43, %v411_v35  ;;  %v523_v10 = vpop.permute.xlu0 %522 }
  0xa1   : > { %v412_v53 = vadd.f32 %v404_v36, %v362_v32  ;;  %v413_v54 = vadd.f32 %v405_v39, %v363_v33 }
  0xa3   : > { %v428_v21 = vpop.permute.xlu1 %427 }
  0xa4   : > { %v454_v46 = vmul.f32 %v443_v2, %v428_v21  ;;  %v455_v47 = vmul.f32 %v447_v3, %v428_v21  ;;  %v533_v25 = vpop.permute.xlu0 %532 }
  0xa6   : > { %v462_v59 = vadd.f32 %v454_v46, %v412_v53  ;;  %v463_v60 = vadd.f32 %v455_v47, %v413_v54 }
  0xa8   : > { %v467_v37 = vpop.permute.xlu1 %466  ;;  %v543_v42 = vpop.permute.xlu0 %542 }
  0xa9   : > { %v484_v40 = vadd.f32 %v467_v37, %v456_v30  ;;  %v485_v41 = vadd.f32 %v467_v37, %v457_v31 }
  0xab   : > { %v492_v48 = vmax.f32 %v484_v40, 0.0  ;;  %v493_v49 = vmax.f32 %v485_v41, 0.0 }
  0xac   : > { %v477_v50 = vpop.permute.xlu1 %476 }
  0xad   : > { %v517_v55 = vpack.c.bf16 %v495_v45, %v493_v49  ;;  %v516_v56 = vpack.c.bf16 %v494_v44, %v492_v48  ;;  %v488_v57 = vadd.f32 %v477_v50, %v460_v51  ;;  %v489_v58 = vadd.f32 %v477_v50, %v461_v52 }
  0xaf   : > { %593 = vmatprep.subr.bf16.mxu0 %v517_v55  ;;  %v496_v63 = vmax.f32 %v488_v57, 0.0  ;;  %v497_v0 = vmax.f32 %v489_v58, 0.0  ;;  %v553_v58 = vpop.permute.xlu0 %552 }
  0xb0   : > { %v482_v61 = vpop.permute.xlu1 %481  ;;  %594 = vmatpush1.bf16.msra.mxu0 %v516_v56 }
  0xb1   : > { %v490_v38 = vadd.f32 %v482_v61, %v462_v59  ;;  %v491_v62 = vadd.f32 %v482_v61, %v463_v60 }
  0xb3   : > { %v498_v1 = vmax.f32 %v490_v38, 0.0  ;;  %v499_v2 = vmax.f32 %v491_v62, 0.0 }
  0xb4   : > { %v528_v14 = vpop.permute.xlu1 %527 }
  0xb5   : > { %v519_v3 = vpack.c.bf16 %v499_v2, %v497_v0  ;;  %v518_v4 = vpack.c.bf16 %v498_v1, %v496_v63 }
  0xb7   : > { %595 = vmatprep.subr.bf16.mxu0 %v519_v3 }
  0xb8   : > { %596 = vmatpush1.bf16.msra.mxu0 %v518_v4  ;;  %v538_v30 = vpop.permute.xlu1 %537 }
  0xbb   : > { %1330 = vmatmul.mubr.msk.bf16.vlgmr.msra.gmra.mrb[0].mxu0 %vm580_vm0, %v1397_v6 }
  0xbc   : > { %635 = vmatprep.mubr.bf16.mxu0 %v1435_v5  ;;  %v548_v47 = vpop.permute.xlu1 %547 }
  0xc0   : > { %v558_v62 = vpop.permute.xlu1 %557 }
  0xc3   : > { %1331 = vmatmul.mubr.msk.bf16.gmra.mrb[4].mxu0 %vm580_vm0, %v1398_v7 }
  0xc4   : > { %645 = vmatprep.mubr.bf16.mxu0 %v1435_v5 }
  0xcb   : > { %1332 = vmatmul.mubr.msk.bf16.gmra.mrb[8].mxu0 %vm580_vm0, %v1399_v8 }
  0xcc   : > { %655 = vmatprep.mubr.bf16.mxu0 %v1435_v5 }
  0xd3   : > { %1333 = vmatmul.mubr.msk.bf16.gmra.mrb[12].mxu0 %vm580_vm0, %v1400_v9 }
  0xd4   : > { %899 = vmatprep.mubr.bf16.mxu0 %v1435_v5 }
 0x18e   : > { %v627_v11 = vpop.f32.mrb[0].mxu0 }
 0x18f   : > { %v628_v12 = vadd.f32 %v627_v11, %v523_v10  ;;  %v629_v13 = vpop.f32.mrb[1].mxu0  ;;  %v1401_v11 = vld [vmem:[%s1715_s5] sm:$0xff]  }
 0x190   : > { %v630_v15 = vadd.f32 %v629_v13, %v523_v10  ;;  %v631_v16 = vpop.f32.mrb[2].mxu0  ;;  %v1403_v13 = vld [vmem:[%s1715_s5 + $0x8] sm:$0xff]  }
 0x191   : > { %v632_v17 = vadd.f32 %v631_v16, %v528_v14  ;;  %v633_v18 = vpop.f32.mrb[3].mxu0  ;;  %v666_v20 = vmax.f32 %v628_v12, 0.0  ;;  %v1402_v12 = vld [vmem:[%s1715_s5 + $0x10] sm:$0xff]   ;;  %v1406_v16 = vld [vmem:[%s1715_s5 + $0x28] sm:$0xff]  }
 0x192   : > { %v634_v19 = vadd.f32 %v633_v18, %v528_v14  ;;  %v667_v22 = vmax.f32 %v630_v15, 0.0  ;;  %v1404_v14 = vld [vmem:[%s1715_s5 + $0x18] sm:$0xff]   ;;  %v1405_v15 = vld [vmem:[%s1715_s5 + $0x20] sm:$0xff]  }
 0x193   : > { %v668_v21 = vmax.f32 %v632_v17, 0.0  ;;  %v1407_v17 = vld [vmem:[%s1715_s5 + $0x30] sm:$0xff]   ;;  %v1408_v18 = vld [vmem:[%s1715_s5 + $0x38] sm:$0xff]  }
 0x194   : > { %v669_v23 = vmax.f32 %v634_v19, 0.0  ;;  %v725_v19 = vpop.permute.xlu0 %724 }
 0x195   : > { %v714_v24 = vpack.c.bf16 %v668_v21, %v666_v20  ;;  %v730_v20 = vpop.permute.xlu1 %729 }
 0x196   : > { %v715_v26 = vpack.c.bf16 %v669_v23, %v667_v22  ;;  %v637_v27 = vpop.f32.mrb[4].mxu0 }
 0x197   : > { %v638_v28 = vadd.f32 %v637_v27, %v533_v25  ;;  %v639_v29 = vpop.f32.mrb[5].mxu0 }
 0x198   : > { %v640_v31 = vadd.f32 %v639_v29, %v533_v25  ;;  %v641_v32 = vpop.f32.mrb[6].mxu0  ;;  %867 = vmatprep.subr.bf16.mxu0 %v715_v26  ;;  %1354 = vmatprep.subr.bf16.mxu1 %v715_v26  ;;  %v735_v21 = vpop.permute.xlu0 %734 }
 0x199   : > { %v642_v33 = vadd.f32 %v641_v32, %v538_v30  ;;  %v643_v34 = vpop.f32.mrb[7].mxu0  ;;  %868 = vmatpush1.bf16.msra.mxu0 %v714_v24  ;;  %1358 = vmatpush1.bf16.msra.mxu1 %v714_v24  ;;  %v670_v37 = vmax.f32 %v638_v28, 0.0  ;;  %v740_v22 = vpop.permute.xlu1 %739 }
 0x19a   : > { %v644_v35 = vadd.f32 %v643_v34, %v538_v30  ;;  %v671_v39 = vmax.f32 %v640_v31, 0.0 }
 0x19b   : > { %v672_v36 = vmax.f32 %v642_v33, 0.0 }
 0x19c   : > { %v673_v40 = vmax.f32 %v644_v35, 0.0  ;;  %v745_v23 = vpop.permute.xlu0 %744 }
 0x19d   : > { %v716_v41 = vpack.c.bf16 %v672_v36, %v670_v37  ;;  %v750_v24 = vpop.permute.xlu1 %749 }
 0x19e   : > { %v717_v43 = vpack.c.bf16 %v673_v40, %v671_v39  ;;  %v647_v44 = vpop.f32.mrb[8].mxu0 }
 0x19f   : > { %v648_v45 = vadd.f32 %v647_v44, %v543_v42  ;;  %v649_v46 = vpop.f32.mrb[9].mxu0 }
 0x1a0   : > { %v650_v48 = vadd.f32 %v649_v46, %v543_v42  ;;  %v651_v49 = vpop.f32.mrb[10].mxu0  ;;  %869 = vmatprep.subr.bf16.mxu0 %v717_v43  ;;  %1355 = vmatprep.subr.bf16.mxu1 %v717_v43 }
 0x1a1   : > { %v652_v50 = vadd.f32 %v651_v49, %v548_v47  ;;  %v653_v51 = vpop.f32.mrb[11].mxu0  ;;  %870 = vmatpush1.bf16.msra.mxu0 %v716_v41  ;;  %1359 = vmatpush1.bf16.msra.mxu1 %v716_v41  ;;  %v674_v53 = vmax.f32 %v648_v45, 0.0 }
 0x1a2   : > { %v654_v52 = vadd.f32 %v653_v51, %v548_v47  ;;  %v675_v55 = vmax.f32 %v650_v48, 0.0  ;;  %v755_v51 = vpop.permute.xlu0 %754 }
 0x1a3   : > { %v676_v54 = vmax.f32 %v652_v50, 0.0 }
 0x1a4   : > { %v677_v56 = vmax.f32 %v654_v52, 0.0  ;;  %v760_v52 = vpop.permute.xlu1 %759 }
 0x1a5   : > { %v718_v57 = vpack.c.bf16 %v676_v54, %v674_v53 }
 0x1a6   : > { %v719_v59 = vpack.c.bf16 %v677_v56, %v675_v55  ;;  %v657_v60 = vpop.f32.mrb[12].mxu0 }
 0x1a7   : > { %v658_v61 = vadd.f32 %v657_v60, %v553_v58  ;;  %v659_v38 = vpop.f32.mrb[13].mxu0 }
 0x1a8   : > { %v660_v63 = vadd.f32 %v659_v38, %v553_v58  ;;  %v661_v0 = vpop.f32.mrb[14].mxu0  ;;  %871 = vmatprep.subr.bf16.mxu0 %v719_v59  ;;  %1356 = vmatprep.subr.bf16.mxu1 %v719_v59 }
 0x1a9   : > { %v662_v1 = vadd.f32 %v661_v0, %v558_v62  ;;  %v663_v2 = vpop.f32.mrb[15].mxu0  ;;  %872 = vmatpush1.bf16.msra.mxu0 %v718_v57  ;;  %1360 = vmatpush1.bf16.msra.mxu1 %v718_v57  ;;  %v678_v4 = vmax.f32 %v658_v61, 0.0 }
 0x1aa   : > { %v664_v3 = vadd.f32 %v663_v2, %v558_v62  ;;  %v679_v7 = vmax.f32 %v660_v63, 0.0 }
 0x1ab   : > { %v680_v6 = vmax.f32 %v662_v1, 0.0 }
 0x1ac   : > { %v681_v8 = vmax.f32 %v664_v3, 0.0 }
 0x1ad   : > { %v720_v9 = vpack.c.bf16 %v680_v6, %v678_v4 }
 0x1ae   : > { %v721_v10 = vpack.c.bf16 %v681_v8, %v679_v7 }
 0x1b0   : > { %873 = vmatprep.subr.bf16.mxu0 %v721_v10  ;;  %1357 = vmatprep.subr.bf16.mxu1 %v721_v10 }
 0x1b1   : > { %874 = vmatpush1.bf16.msra.mxu0 %v720_v9  ;;  %1361 = vmatpush1.bf16.msra.mxu1 %v720_v9 }
 0x1b4   : > { %1342 = vmatmul.mubr.msk.bf16.vlgmr.msra.gmra.mrb[16].mxu0 %vm842_vm1, %v1401_v11  ;;  %1344 = vmatmul.mubr.msk.bf16.vlgmr.msra.gmra.mrb[0].mxu1 %vm842_vm1, %v1402_v12 }
 0x1b5   : > { %909 = vmatprep.mubr.bf16.mxu0 %v1435_v5  ;;  %929 = vmatprep.mubr.bf16.mxu1 %v1435_v5 }
 0x1bc   : > { %1343 = vmatmul.mubr.msk.bf16.gmra.mrb[20].mxu0 %vm842_vm1, %v1403_v13  ;;  %1345 = vmatmul.mubr.msk.bf16.gmra.mrb[4].mxu1 %vm842_vm1, %v1404_v14 }
 0x1bd   : > { %939 = vmatprep.mubr.bf16.mxu1 %v1435_v5 }
 0x1c4   : > { %1346 = vmatmul.mubr.msk.bf16.gmra.mrb[8].mxu1 %vm842_vm1, %v1405_v15 }
 0x1c5   : > { %949 = vmatprep.mubr.bf16.mxu1 %v1435_v5 }
 0x1cc   : > { %1347 = vmatmul.mubr.msk.bf16.gmra.mrb[12].mxu1 %vm842_vm1, %v1406_v16 }
 0x1cd   : > { %959 = vmatprep.mubr.bf16.mxu1 %v1435_v5 }
 0x1d4   : > { %1348 = vmatmul.mubr.msk.bf16.gmra.mrb[16].mxu1 %vm842_vm1, %v1407_v17  ;;  %v765_v17 = vpop.permute.xlu0 %764 }
 0x1d5   : > { %969 = vmatprep.mubr.bf16.mxu1 %v1435_v5 }
 0x1dc   : > { %1349 = vmatmul.mubr.msk.bf16.gmra.mrb[20].mxu1 %vm842_vm1, %v1408_v18 }
 0x287   : > { %v901_v25 = vpop.f32.mrb[16].mxu0  ;;  %v921_v26 = vpop.f32.mrb[0].mxu1 }
 0x288   : > { %v902_v27 = vadd.f32 %v901_v25, %v725_v19  ;;  %v922_v28 = vadd.f32 %v921_v26, %v745_v23  ;;  %v903_v29 = vpop.f32.mrb[17].mxu0  ;;  %v923_v30 = vpop.f32.mrb[1].mxu1 }
 0x289   : > { %v904_v31 = vadd.f32 %v903_v29, %v725_v19  ;;  %v924_v5 = vadd.f32 %v923_v30, %v745_v23  ;;  %v905_v32 = vpop.f32.mrb[18].mxu0  ;;  %v925_v33 = vpop.f32.mrb[2].mxu1 }
 0x28a   : > { %v980_v34 = vmax.f32 %v902_v27, 0.0  ;;  %v988_v35 = vmax.f32 %v922_v28, 0.0  ;;  %v906_v37 = vadd.f32 %v905_v32, %v730_v20  ;;  %v926_v36 = vadd.f32 %v925_v33, %v750_v24  ;;  %v907_v39 = vpop.f32.mrb[19].mxu0  ;;  %v927_v40 = vpop.f32.mrb[3].mxu1 }
 0x28b   : > { %v981_v41 = vmax.f32 %v904_v31, 0.0  ;;  %v989_v42 = vmax.f32 %v924_v5, 0.0  ;;  %v908_v43 = vadd.f32 %v907_v39, %v730_v20  ;;  %v928_v44 = vadd.f32 %v927_v40, %v750_v24  ;;  %v770_v24 = vpop.permute.xlu1 %769  ;;  %v775_v33 = vpop.permute.xlu0 %774 }
 0x28c   : > { %v982_v45 = vmax.f32 %v906_v37, 0.0  ;;  %v990_v46 = vmax.f32 %v926_v36, 0.0 }
 0x28d   : > { %v983_v47 = vmax.f32 %v908_v43, 0.0  ;;  %v991_v48 = vmax.f32 %v928_v44, 0.0  ;;  %v1195_v49 = vmax.f32 %v988_v35, %v989_v42  ;;  %v1183_v50 = vmax.f32 %v980_v34, %v981_v41 }
 0x28f   : > { %v931_v53 = vpop.f32.mrb[4].mxu1  ;;  %1196 = vmax.xlane.f32.xlu1 %v1195_v49  ;;  %v911_v54 = vpop.f32.mrb[20].mxu0  ;;  %1184 = vmax.xlane.f32.xlu0 %v1183_v50  ;;  %v1186_v55 = vmax.f32 %v982_v45, %v983_v47  ;;  %v1198_v56 = vmax.f32 %v990_v46, %v991_v48 }
 0x290   : > { %v932_v57 = vadd.f32 %v931_v53, %v755_v51  ;;  %v912_v58 = vadd.f32 %v911_v54, %v735_v21  ;;  %v913_v59 = vpop.f32.mrb[21].mxu0  ;;  %v933_v60 = vpop.f32.mrb[5].mxu1 }
 0x291   : > { %v914_v61 = vadd.f32 %v913_v59, %v735_v21  ;;  %v934_v38 = vadd.f32 %v933_v60, %v755_v51  ;;  %v915_v62 = vpop.f32.mrb[22].mxu0  ;;  %v935_v63 = vpop.f32.mrb[6].mxu1 }
 0x292   : > { %v992_v0 = vmax.f32 %v932_v57, 0.0  ;;  %v984_v1 = vmax.f32 %v912_v58, 0.0  ;;  %v916_v2 = vadd.f32 %v915_v62, %v740_v22  ;;  %v936_v3 = vadd.f32 %v935_v63, %v760_v52  ;;  %v917_v4 = vpop.f32.mrb[23].mxu0  ;;  %v937_v6 = vpop.f32.mrb[7].mxu1 }
 0x293   : > { %v985_v7 = vmax.f32 %v914_v61, 0.0  ;;  %v993_v8 = vmax.f32 %v934_v38, 0.0  ;;  %v918_v9 = vadd.f32 %v917_v4, %v740_v22  ;;  %v938_v10 = vadd.f32 %v937_v6, %v760_v52  ;;  %1187 = vmax.xlane.f32.xlu1 %v1186_v55  ;;  %1199 = vmax.xlane.f32.xlu0 %v1198_v56  ;;  %v780_v39 = vpop.permute.xlu1 %779  ;;  %v785_v50 = vpop.permute.xlu0 %784 }
 0x294   : > { %v986_v11 = vmax.f32 %v916_v2, 0.0  ;;  %v994_v12 = vmax.f32 %v936_v3, 0.0 }
 0x295   : > { %v987_v13 = vmax.f32 %v918_v9, 0.0  ;;  %v995_v14 = vmax.f32 %v938_v10, 0.0  ;;  %v1201_v15 = vmax.f32 %v992_v0, %v993_v8  ;;  %v1189_v16 = vmax.f32 %v984_v1, %v985_v7 }
 0x297   : > { %v941_v18 = vpop.f32.mrb[8].mxu1  ;;  %1202 = vmax.xlane.f32.xlu1 %v1201_v15  ;;  %1190 = vmax.xlane.f32.xlu0 %v1189_v16  ;;  %v1192_v19 = vmax.f32 %v986_v11, %v987_v13  ;;  %v1204_v20 = vmax.f32 %v994_v12, %v995_v14  ;;  %v790_v55 = vpop.permute.xlu1 %789 }
 0x298   : > { %v942_v21 = vadd.f32 %v941_v18, %v765_v17  ;;  %v943_v23 = vpop.f32.mrb[9].mxu1  ;;  %v795_v1 = vpop.permute.xlu0 %794 }
 0x299   : > { %v944_v25 = vadd.f32 %v943_v23, %v765_v17  ;;  %v945_v22 = vpop.f32.mrb[10].mxu1 }
 0x29a   : > { %v996_v26 = vmax.f32 %v942_v21, 0.0  ;;  %v946_v27 = vadd.f32 %v945_v22, %v770_v24  ;;  %v947_v28 = vpop.f32.mrb[11].mxu1 }
 0x29b   : > { %v997_v29 = vmax.f32 %v944_v25, 0.0  ;;  %v948_v30 = vadd.f32 %v947_v28, %v770_v24  ;;  %1193 = vmax.xlane.f32.xlu0 %v1192_v19  ;;  %v800_v7 = vpop.permute.xlu1 %799 }
 0x29c   : > { %v998_v31 = vmax.f32 %v946_v27, 0.0 }
 0x29d   : > { %v999_v5 = vmax.f32 %v948_v30, 0.0  ;;  %v1207_v32 = vmax.f32 %v996_v26, %v997_v29 }
 0x29f   : > { %v951_v34 = vpop.f32.mrb[12].mxu1  ;;  %1208 = vmax.xlane.f32.xlu1 %v1207_v32  ;;  %1205 = vmax.xlane.f32.xlu0 %v1204_v20  ;;  %v1210_v35 = vmax.f32 %v998_v31, %v999_v5 }
 0x2a0   : > { %v952_v37 = vadd.f32 %v951_v34, %v775_v33  ;;  %v953_v36 = vpop.f32.mrb[13].mxu1 }
 0x2a1   : > { %v954_v40 = vadd.f32 %v953_v36, %v775_v33  ;;  %v955_v41 = vpop.f32.mrb[14].mxu1 }
 0x2a2   : > { %v1000_v42 = vmax.f32 %v952_v37, 0.0  ;;  %v956_v43 = vadd.f32 %v955_v41, %v780_v39  ;;  %v957_v44 = vpop.f32.mrb[15].mxu1 }
 0x2a3   : > { %v1001_v45 = vmax.f32 %v954_v40, 0.0  ;;  %v958_v46 = vadd.f32 %v957_v44, %v780_v39  ;;  %1211 = vmax.xlane.f32.xlu0 %v1210_v35 }
 0x2a4   : > { %v1002_v47 = vmax.f32 %v956_v43, 0.0 }
 0x2a5   : > { %v1003_v48 = vmax.f32 %v958_v46, 0.0  ;;  %v1213_v49 = vmax.f32 %v1000_v42, %v1001_v45 }
 0x2a7   : > { %v961_v51 = vpop.f32.mrb[16].mxu1  ;;  %1214 = vmax.xlane.f32.xlu1 %v1213_v49  ;;  %v1216_v52 = vmax.f32 %v1002_v47, %v1003_v48 }
 0x2a8   : > { %v962_v53 = vadd.f32 %v961_v51, %v785_v50  ;;  %v963_v54 = vpop.f32.mrb[17].mxu1 }
 0x2a9   : > { %v964_v56 = vadd.f32 %v963_v54, %v785_v50  ;;  %v965_v57 = vpop.f32.mrb[18].mxu1  ;;  %1217 = vmax.xlane.f32.xlu0 %v1216_v52 }
 0x2aa   : > { %v1004_v58 = vmax.f32 %v962_v53, 0.0  ;;  %v966_v59 = vadd.f32 %v965_v57, %v790_v55  ;;  %v967_v60 = vpop.f32.mrb[19].mxu1 }
 0x2ab   : > { %v1005_v61 = vmax.f32 %v964_v56, 0.0  ;;  %v968_v38 = vadd.f32 %v967_v60, %v790_v55 }
 0x2ac   : > { %v1006_v62 = vmax.f32 %v966_v59, 0.0 }
 0x2ad   : > { %v1007_v63 = vmax.f32 %v968_v38, 0.0  ;;  %v1219_v0 = vmax.f32 %v1004_v58, %v1005_v61 }
 0x2af   : > { %v971_v2 = vpop.f32.mrb[20].mxu1  ;;  %1220 = vmax.xlane.f32.xlu1 %v1219_v0  ;;  %v1222_v3 = vmax.f32 %v1006_v62, %v1007_v63 }
 0x2b0   : > { %v972_v4 = vadd.f32 %v971_v2, %v795_v1  ;;  %v973_v6 = vpop.f32.mrb[21].mxu1 }
 0x2b1   : > { %v974_v8 = vadd.f32 %v973_v6, %v795_v1  ;;  %v975_v9 = vpop.f32.mrb[22].mxu1  ;;  %1223 = vmax.xlane.f32.xlu0 %v1222_v3 }
 0x2b2   : > { %v1008_v10 = vmax.f32 %v972_v4, 0.0  ;;  %v976_v11 = vadd.f32 %v975_v9, %v800_v7  ;;  %v977_v12 = vpop.f32.mrb[23].mxu1 }
 0x2b3   : > { %v1009_v13 = vmax.f32 %v974_v8, 0.0  ;;  %v978_v14 = vadd.f32 %v977_v12, %v800_v7 }
 0x2b4   : > { %v1010_v15 = vmax.f32 %v976_v11, 0.0 }
 0x2b5   : > { %v1011_v16 = vmax.f32 %v978_v14, 0.0  ;;  %v1225_v17 = vmax.f32 %v1008_v10, %v1009_v13 }
 0x2b7   : > { %1226 = vmax.xlane.f32.xlu1 %v1225_v17  ;;  %v1228_v18 = vmax.f32 %v1010_v15, %v1011_v16 }
 0x2b9   : > { %1229 = vmax.xlane.f32.xlu0 %v1228_v18 }
 0x31c   : > { %v1197_v19 = vpop.xlane.xlu1 %1196  ;;  %v1185_v20 = vpop.xlane.xlu0 %1184 }
 0x31d   : > { %1236 = vst.msk [vmem:[%s1667_s28 + $0x20] sm:$0xff] %vm1231_vm2, %v1197_v19  ;;  %1232 = vst.msk [vmem:[%s1667_s28] sm:$0xff] %vm1231_vm2, %v1185_v20 }
 0x320   : > { %v1188_v21 = vpop.xlane.xlu1 %1187  ;;  %v1200_v23 = vpop.xlane.xlu0 %1199 }
 0x321   : > { %1233 = vst.msk [vmem:[%s1667_s28 + $0x8] sm:$0xff] %vm1231_vm2, %v1188_v21  ;;  %1237 = vst.msk [vmem:[%s1667_s28 + $0x28] sm:$0xff] %vm1231_vm2, %v1200_v23 }
 0x324   : > { %v1203_v24 = vpop.xlane.xlu1 %1202  ;;  %v1191_v25 = vpop.xlane.xlu0 %1190 }
 0x325   : > { %1238 = vst.msk [vmem:[%s1667_s28 + $0x30] sm:$0xff] %vm1231_vm2, %v1203_v24  ;;  %1234 = vst.msk [vmem:[%s1667_s28 + $0x10] sm:$0xff] %vm1231_vm2, %v1191_v25 }
 0x328   : > { %v1194_v22 = vpop.xlane.xlu0 %1193 }
 0x329   : > { %1235 = vst.msk [vmem:[%s1667_s28 + $0x18] sm:$0xff] %vm1231_vm2, %v1194_v22 }
 0x32c   : > { %v1209_v26 = vpop.xlane.xlu1 %1208  ;;  %v1206_v27 = vpop.xlane.xlu0 %1205 }
 0x32d   : > { %1240 = vst.msk [vmem:[%s1667_s28 + $0x40] sm:$0xff] %vm1231_vm2, %v1209_v26  ;;  %1239 = vst.msk [vmem:[%s1667_s28 + $0x38] sm:$0xff] %vm1231_vm2, %v1206_v27 }
 0x330   : > { %v1212_v28 = vpop.xlane.xlu0 %1211 }
 0x331   : > { %1241 = vst.msk [vmem:[%s1667_s28 + $0x48] sm:$0xff] %vm1231_vm2, %v1212_v28 }
 0x334   : > { %v1215_v29 = vpop.xlane.xlu1 %1214 }
 0x335   : > { %1242 = vst.msk [vmem:[%s1667_s28 + $0x50] sm:$0xff] %vm1231_vm2, %v1215_v29 }
 0x336   : > { %v1218_v30 = vpop.xlane.xlu0 %1217 }
 0x337   : > { %1243 = vst.msk [vmem:[%s1667_s28 + $0x58] sm:$0xff] %vm1231_vm2, %v1218_v30 }
 0x33c   : > { %v1221_v31 = vpop.xlane.xlu1 %1220 }
 0x33d   : > { %1244 = vst.msk [vmem:[%s1667_s28 + $0x60] sm:$0xff] %vm1231_vm2, %v1221_v31 }
 0x33e   : > { %v1224_v5 = vpop.xlane.xlu0 %1223 }
 0x33f   : > { %1245 = vst.msk [vmem:[%s1667_s28 + $0x68] sm:$0xff] %vm1231_vm2, %v1224_v5 }
 0x344   : > { %v1227_v32 = vpop.xlane.xlu1 %1226 }
 0x345   : > { %1246 = vst.msk [vmem:[%s1667_s28 + $0x70] sm:$0xff] %vm1231_vm2, %v1227_v32 }
 0x346   : > { %v1230_v33 = vpop.xlane.xlu0 %1229 }
 0x347   : > { %1247 = vst.msk [vmem:[%s1667_s28 + $0x78] sm:$0xff] %vm1231_vm2, %v1230_v33 }
 0x348 PF: > { %s17_s26 = sadd.s32 1, %s1431_s26   ;;  %s1718_s24 = smov %s1427_s25 }
 0x349   : > { %p14_p5 = scmp.ge.s32.totalorder %s17_s26, 4   ;;  %s1719_s25 = smov %s1721_s27 }
 0x34b   :  { %16 = sbr.rel (!%p14_p5) target bundleno = 2 (0x2), region = 90 }

// kernel: _lambda_.5
= control target key start
LH: loop header
LB: loop body
LE: loop exit
PB: predicated region body
PF: predicated region fallthrough
CT: control target
= control target key end

     0   :  { %s1538_s24 = smov 0   ;;  %s1540_s25 = smov 0   ;;  %s1814_s0 = inlined_call_operand.vmem [shape: f32[2,3,256], index: 0, kind: input, shape index: {}]   ;;  %s1815_s1 = inlined_call_operand.vmem [shape: f32[2,96,1], index: 1, kind: input, shape index: {}]   ;;  %s1816_s2 = inlined_call_operand.vmem [shape: f32[3,32,3], index: 2, kind: input, shape index: {}]   ;;  %s1817_s3 = inlined_call_operand.vmem [shape: f32[3,6,32], index: 3, kind: input, shape index: {}]   ;;  %s1818_s4 = inlined_call_operand.vmem [shape: f32[3,6,1], index: 4, kind: input, shape index: {}]   ;;  %s1819_s5 = inlined_call_operand.vmem [shape: f32[3,2,3,256], index: 5, kind: output, shape index: {0}]   ;;  %s1820_s6 = inlined_call_operand.vmem [shape: f32[3,2,3,256], index: 6, kind: output, shape index: {1}]   ;;  %s1821_s7 = inlined_call_operand.vmem [shape: f32[3,2,3,256], index: 7, kind: output, shape index: {2}]  }
   0x1   :  { %s1542_s26 = smov 0   ;;  %s1544_s27 = smov 0  }
   0x2   :  { %s1546_s28 = smov 0  }
   0x3 LB: > { %s1321_s29 = sadd.s32 4294967295, %s1492_s28   ;;  %s30_s30 = sadd.s32 1, %s1488_s27  ;;  %s1492_s28 = sphi %s1546_s28, %s18_s28   ;;  %s1488_s27 = sphi %s1544_s27, %s1826_s27   ;;  %s1484_s26 = sphi %s1542_s26, %s1825_s26   ;;  %s1480_s25 = sphi %s1540_s25, %s1824_s25   ;;  %s1476_s24 = sphi %s1538_s24, %s1823_s24  }
   0x4   : > { %p32_p0 = scmp.ge.s32.totalorder %s30_s30, 2  ;;  %s156_s8 = sadd.s32 1, %s1480_s25 }
   0x5   : > { %p166_p1 = scmp.ne.s32.totalorder %s1480_s25, %s1476_s24  ;;  %p167_p2 = scmp.eq.s32.totalorder %s1321_s29, 1 }
   0x6   : > { %s1828_s30 = smov (%p32_p0, %s30_s30), 0  ;;  %p1325_p4 = scmp.ge.s32.totalorder %s1492_s28, 1 }
   0x7   : > { %p1570_p3 = por %p167_p2, %p166_p1  ;;  %s151_s10 = ssub.s32 %s1488_s27, %s1828_s30 }
   0x8   : > { %p277_p5 = scmp.lt.s32.totalorder %s1492_s28, 3  ;;  %p154_p6 = scmp.eq.s32.totalorder %s151_s10, 0 }
   0xa   : > { %p278_p7 = pnand %p1325_p4, %p277_p5 }
   0xb   : > { %s1579_s11 = scalar_select %p154_p6, %s1480_s25, %s156_s8  }
   0xc   : > { %281 = sbr.rel (%p278_p7) target bundleno = 946 (0x3b2), region = 40  ;;  %v1329_v0 = vld [vmem:[%s1816_s2 + $0x40] sm:$0xff] (!%p278_p7)  ;;  %v1332_v1 = vld [vmem:[%s1816_s2 + $0x58] sm:$0xff] (!%p278_p7)  ;;  %p326_p8 = scmp.lt.s32.totalorder (!%p278_p7), %s1484_s26, 1  ;;  %v1494_v2 = vmov (!%p278_p7), 0   ;;  %v1330_v3 = vld [vmem:[%s1816_s2 + $0x48] sm:$0xff] (!%p278_p7)  ;;  %v374_v31 = vlaneseq (!%p278_p7) }
   0xd   : > { %1432 = vset.pattern.permute.xlu0 (!%p278_p7), %v1494_v2  ;;  %1433 = vset.pattern.permute.xlu1 (!%p278_p7), %v1494_v2  ;;  %v1331_v5 = vld [vmem:[%s1816_s2 + $0x50] sm:$0xff] (!%p278_p7)  ;;  %v1495_v10 = vmov (!%p278_p7), 0.0   ;;  %v1339_v11 = vld [vmem:[%s1816_s2 + $0x20] sm:$0xff] (!%p278_p7)  ;;  %v1496_v12 = vmov (!%p278_p7), 1   ;;  %v1340_v13 = vld [vmem:[%s1816_s2 + $0x28] sm:$0xff] (!%p278_p7)  ;;  %v1497_v15 = vmov (!%p278_p7), 2  }
   0xe   : > { %355 = vperm.xlu0 (!%p278_p7), %1432, %v1329_v0   ;;  %370 = vperm.xlu1 (!%p278_p7), %1433, %v1332_v1   ;;  %v1334_v9 = vld [vmem:[%s1818_s4 + $0x10] sm:$0x3f] (!%p278_p7)  ;;  %v1342_v16 = vld [vmem:[%s1816_s2 + $0x38] sm:$0xff] (!%p278_p7)  ;;  %v1344_v18 = vld [vmem:[%s1818_s4 + $0x8] sm:$0x3f] (!%p278_p7)  ;;  %v1651_v32 = vshrl.u32 (!%p278_p7), %v374_v31, 7 }
   0xf   : > { %513 = vmatprep.mubr.f32.mxu0 (!%p278_p7), %v1495_v10  ;;  %766 = vmatprep.mubr.f32.mxu1 (!%p278_p7), %v1495_v10  ;;  %v1341_v14 = vld [vmem:[%s1816_s2 + $0x30] sm:$0xff] (!%p278_p7)  ;;  %v820_v19 = vld [vmem:[%s1816_s2 + $0x8] sm:$0xff] (!%p278_p7)  ;;  %v822_v23 = vld [vmem:[%s1816_s2 + $0x18] sm:$0xff] (!%p278_p7)  ;;  %vm445_vm0 = vcmask (!%p278_p7), 261120   ;;  %s310_s8 = sand.u32 (!%p278_p7), 1, %s1476_s24   ;;  %vm540_vm1 = vcmask (!%p278_p7), 1040384  }
  0x10   : > { %v819_v26 = vld [vmem:[%s1816_s2] sm:$0xff] (!%p278_p7)  ;;  %v821_v28 = vld [vmem:[%s1816_s2 + $0x10] sm:$0xff] (!%p278_p7)  ;;  %v1657_v33 = vsub.s32 (!%p278_p7), 0, %v1651_v32  ;;  %v380_v34 = vsub.s32 (!%p278_p7), 4, %v1651_v32  ;;  %s1683_s10 = smul.u32 (!%p278_p7), 24, %s310_s8 }
  0x11   : > { %v900_v30 = vld [vmem:[%s1818_s4] sm:$0x3f] (!%p278_p7) }
  0x12   : > { %360 = vperm.xlu0 (!%p278_p7), %1432, %v1330_v3   ;;  %s1692_s24 = scalar_lea.vmem (!%p278_p7), [#allocation3], %s1683_s10  ;;  %s1696_s12 = scalar_lea.vmem (!%p278_p7), [#allocation4], %s1683_s10 }
  0x13   : > { %s1589_s16 = scalar_select %p326_p8, %s1484_s26, 1 }
  0x14   : > { %s1721_s13 = scalar_lea.vmem [#allocation2], %s1683_s10 }
  0x15   : > { %s1387_s19 = smul.u32 96, %s1589_s16  ;;  %s1358_s20 = sshll.u32 %s1589_s16, 3 }
  0x16   : > { %365 = vperm.xlu0 %1432, %v1331_v5   ;;  %s333_s29 = scalar_lea.vmem %s1814_s0, %s1358_s20 }
  0x17   : > { %s1598_s22 = scalar_lea.vmem %s1815_s1, %s1387_s19  ;;  %v1660_v35 = vld [vmem:[%s333_s29] sm:$0x77]  ;;  %s1359_s19 = sshll.u32 (%p1570_p3), %s1484_s26, 3 }
  0x18   : > { %v349_v4 = vld [vmem:[%s1598_s22 + $0x40] sm:$0xff]  ;;  %v350_v6 = vld [vmem:[%s1598_s22 + $0x48] sm:$0xff]  ;;  %v351_v7 = vld [vmem:[%s1598_s22 + $0x50] sm:$0xff]  ;;  %v1664_v37 = vrot.slane %v1660_v35, %v1657_v33  ;;  %v1667_v38 = vrot.slane %v1660_v35, %v380_v34  ;;  %s1042_s23 = scalar_lea.vmem (%p1570_p3), %s1819_s5, %s1359_s19 }
  0x19   : > { %402 = vperm.xlu1 %1433, %v349_v4   ;;  %v352_v8 = vld [vmem:[%s1598_s22 + $0x58] sm:$0xff]  ;;  %v575_v17 = vld [vmem:[%s1598_s22 + $0x28] sm:$0xff]  ;;  %v574_v20 = vld [vmem:[%s1598_s22 + $0x20] sm:$0xff] }
  0x1a   : > { %412 = vperm.xlu0 %1432, %v351_v7   ;;  %v824_v21 = vld [vmem:[%s1598_s22 + $0x8] sm:$0xff]  ;;  %v576_v22 = vld [vmem:[%s1598_s22 + $0x30] sm:$0xff]  ;;  %v577_v24 = vld [vmem:[%s1598_s22 + $0x38] sm:$0xff]  ;;  %v387_v40 = vrot.slane %v1664_v37, %v1657_v33  ;;  %v391_v41 = vrot.slane %v1667_v38, %v1657_v33 }
  0x1b   : > { %v826_v25 = vld [vmem:[%s1598_s22 + $0x18] sm:$0xff]  ;;  %v823_v27 = vld [vmem:[%s1598_s22] sm:$0xff]  ;;  %v825_v29 = vld [vmem:[%s1598_s22 + $0x10] sm:$0xff] }
  0x1d   : > { %407 = vperm.xlu1 %1433, %v350_v6  }
  0x1e   : > { %442 = vperm.xlu0 %1432, %v1334_v9  }
  0x21   : > { %417 = vperm.xlu1 %1433, %v352_v8  }
  0x22   : > { %1435 = vset.pattern.permute.xlu0 %v1496_v12 }
  0x23   : > { %585 = vperm.xlu0 %1435, %v1340_v13  }
  0x25   : > { %1434 = vset.pattern.permute.xlu1 %v1496_v12 }
  0x26   : > { %580 = vperm.xlu1 %1434, %v1339_v11  }
  0x27   : > { %590 = vperm.xlu0 %1435, %v1341_v14  }
  0x2a   : > { %1436 = vset.pattern.permute.xlu1 %v1497_v15 }
  0x2b   : > { %615 = vperm.xlu1 %1436, %v1339_v11   ;;  %1438 = vset.pattern.permute.xlu0 %v1497_v15 }
  0x2c   : > { %623 = vperm.xlu0 %1438, %v1341_v14  }
  0x2f   : > { %619 = vperm.xlu1 %1436, %v1340_v13   ;;  %v1333_v13 = vld [vmem:[%s1817_s3 + $0x10] sm:$0x3f] }
  0x30   : > { %1441 = vset.pattern.permute.xlu0 %v1494_v2 }
  0x31   : > { %661 = vperm.xlu0 %1441, %v575_v17  }
  0x33   : > { %1437 = vset.pattern.permute.xlu1 %v1496_v12 }
  0x34   : > { %595 = vperm.xlu1 %1437, %v1342_v16  }
  0x35   : > { %696 = vperm.xlu0 %1441, %v1344_v18  }
  0x38   : > { %1439 = vset.pattern.permute.xlu1 %v1497_v15 }
  0x39   : > { %627 = vperm.xlu1 %1439, %v1342_v16   ;;  %834 = vperm.xlu0 %1441, %v820_v19  }
  0x3d   : > { %1440 = vset.pattern.permute.xlu1 %v1494_v2  ;;  %870 = vperm.xlu0 %1441, %v824_v21  }
  0x3e   : > { %656 = vperm.xlu1 %1440, %v574_v20  }
  0x41   : > { %844 = vperm.xlu0 %1441, %v822_v23  }
  0x42   : > { %666 = vperm.xlu1 %1440, %v576_v22  }
  0x45   : > { %880 = vperm.xlu0 %1441, %v826_v25  }
  0x46   : > { %671 = vperm.xlu1 %1440, %v577_v24  }
  0x4a   : > { %829 = vperm.xlu1 %1440, %v819_v26  }
  0x4e   : > { %865 = vperm.xlu1 %1440, %v823_v27  }
  0x52   : > { %839 = vperm.xlu1 %1440, %v821_v28  }
  0x56   : > { %875 = vperm.xlu1 %1440, %v825_v29  }
  0x5a   : > { %903 = vperm.xlu1 %1440, %v900_v30  }
  0x8d   : > { %v356_v36 = vpop.permute.xlu0 %355  ;;  %v371_v39 = vpop.permute.xlu1 %370 }
  0x8e   : > { %v392_v44 = vmul.f32 %v387_v40, %v356_v36  ;;  %v393_v45 = vmul.f32 %v391_v41, %v356_v36  ;;  %v398_v56 = vmul.f32 %v387_v40, %v371_v39  ;;  %v399_v57 = vmul.f32 %v391_v41, %v371_v39 }
  0x91   : > { %v361_v42 = vpop.permute.xlu0 %360 }
  0x92   : > { %v394_v47 = vmul.f32 %v387_v40, %v361_v42  ;;  %v395_v48 = vmul.f32 %v391_v41, %v361_v42 }
  0x95   : > { %v366_v46 = vpop.permute.xlu0 %365 }
  0x96   : > { %v396_v52 = vmul.f32 %v387_v40, %v366_v46  ;;  %v397_v53 = vmul.f32 %v391_v41, %v366_v46 }
  0x98   : > { %v403_v43 = vpop.permute.xlu1 %402 }
  0x99   : > { %v420_v49 = vadd.f32 %v403_v43, %v392_v44  ;;  %v421_v50 = vadd.f32 %v403_v43, %v393_v45  ;;  %v413_v58 = vpop.permute.xlu0 %412 }
  0x9a   : > { %v424_v60 = vadd.f32 %v413_v58, %v396_v52  ;;  %v425_v61 = vadd.f32 %v413_v58, %v397_v53 }
  0x9b   : > { %v428_v63 = vmax.f32 %v420_v49, 0.0  ;;  %v429_v1 = vmax.f32 %v421_v50, 0.0  ;;  %v600_v49 = vsub.s32 1, %v1651_v32  ;;  %v632_v50 = vsub.s32 2, %v1651_v32 }
  0x9c   : > { %v408_v51 = vpop.permute.xlu1 %407  ;;  %v432_v6 = vmax.f32 %v424_v60, 0.0  ;;  %v433_v7 = vmax.f32 %v425_v61, 0.0 }
  0x9d   : > { %v422_v54 = vadd.f32 %v408_v51, %v394_v47  ;;  %v423_v55 = vadd.f32 %v408_v51, %v395_v48  ;;  %v443_v16 = vpop.permute.xlu0 %442 }
  0x9f   : > { %v430_v59 = vmax.f32 %v422_v54, 0.0  ;;  %v431_v62 = vmax.f32 %v423_v55, 0.0 }
  0xa0   : > { %v418_v0 = vpop.permute.xlu1 %417 }
  0xa1   : > { %v426_v2 = vadd.f32 %v418_v0, %v398_v56  ;;  %v427_v3 = vadd.f32 %v418_v0, %v399_v57  ;;  %v1362_v4 = vpack.c.bf16 %v431_v62, %v429_v1  ;;  %v1364_v5 = vpack.c.bf16 %v430_v59, %v428_v63 }
  0xa2   : > { %v586_v40 = vpop.permute.xlu0 %585 }
  0xa3   : > { %v434_v8 = vmax.f32 %v426_v2, 0.0  ;;  %v435_v9 = vmax.f32 %v427_v3, 0.0  ;;  %1363 = vmatprep.subr.bf16.mxu0 %v1362_v4 }
  0xa4   : > { %1365 = vmatpush1.bf16.msra.mxu0 %v1364_v5 }
  0xa5   : > { %v1366_v11 = vpack.c.bf16 %v435_v9, %v433_v7  ;;  %v1368_v12 = vpack.c.bf16 %v434_v8, %v432_v6  ;;  %v1678_v14 = vpop.permute.xlu1 %580 }
  0xa6   : > { %v591_v47 = vpop.permute.xlu0 %590 }
  0xa7   : > { %1367 = vmatprep.subr.bf16.mxu0 %v1366_v11 }
  0xa8   : > { %1369 = vmatpush1.bf16.msra.mxu0 %v1368_v12 }
  0xaa   : > { %v1681_v15 = vpop.permute.xlu1 %615 }
  0xab   : > { %1335 = vmatmul.mubr.msk.f32.vlgmr.msra.gmra.mrb[0].mxu0 %vm445_vm0, %v1333_v13  ;;  %v624_v56 = vpop.permute.xlu0 %623 }
  0xac   : > { %973 = vmatprep.mubr.f32.mxu0 %v1495_v10 }
  0xae   : > { %v620_v10 = vpop.permute.xlu1 %619 }
  0xb0   : > { %v662_v11 = vpop.permute.xlu0 %661 }
  0xb3   : > { %v596_v39 = vpop.permute.xlu1 %595 }
  0xb8   : > { %v628_v41 = vpop.permute.xlu1 %627 }
  0xbd   : > { %v657_v48 = vpop.permute.xlu1 %656 }
  0xc1   : > { %v667_v59 = vpop.permute.xlu1 %666 }
 0x17e   : > { %v515_v17 = vpop.f32.mrb[0].mxu0 }
 0x17f   : > { %v516_v18 = vadd.f32 %v515_v17, %v443_v16  ;;  %v517_v19 = vpop.f32.mrb[1].mxu0 }
 0x180   : > { %v518_v20 = vadd.f32 %v517_v19, %v443_v16  ;;  %v672_v16 = vpop.permute.xlu1 %671 }
 0x181   : > { %v525_v21 = vmul.f32 -0.5, %v516_v18  ;;  %v543_v22 = vsel %vm540_vm1, %v1664_v37, %v516_v18  ;;  %v545_v23 = vrot.slane %v516_v18, 3 }
 0x182   : > { %v522_v24 = vcombine.low %v516_v18, %v518_v20  ;;  %v526_v25 = vmul.f32 -0.5, %v518_v20  ;;  %v544_v26 = vsel %vm540_vm1, %v1667_v38, %v518_v20  ;;  %v546_v27 = vrot.slane %v518_v20, 3 }
 0x183   : > { %v527_v28 = vmul.f32 1.442695, %v525_v21  ;;  %v549_v29 = vsel %vm540_vm1, 0.0, %v545_v23  ;;  %v559_v30 = vcombine.low %v543_v22, %v544_v26 }
 0x184   : > { %v529_v31 = vmul.f32 1.442695, %v526_v25  ;;  %v550_v34 = vsel %vm540_vm1, 0.0, %v546_v27  ;;  %v524_v45 = vsub.f32 %v1660_v35, %v522_v24 }
 0x185   : > { %1442 = vpow2.f32 %v527_v28  ;;  %1337 = vst [vmem:[%s1692_s24 + $0x10] sm:$0x77] %v559_v30  ;;  %v565_v36 = vcombine.low %v549_v29, %v550_v34 }
 0x186   : > { %1444 = vpow2.f32 %v529_v31 }
 0x187   : > { %1338 = vst [vmem:[%s1696_s12 + $0x10] sm:$0x77] %v565_v36 }
 0x18f   : > { %v1443_v42 = vpop.eup %1442 }
 0x190   : > { %v1445_v43 = vpop.eup %1444 }
 0x191   : > { %v533_v44 = vcombine.high %v1443_v42, %v1445_v43 }
 0x193   : > { %v534_v46 = vrot.slane %v533_v44, 7 }
 0x195   : > { %v536_v51 = vmul.f32 %v534_v46, %v524_v45  ;;  %v1343_v45 = vld [vmem:[%s1817_s3 + $0x8] sm:$0x3f]  ;;  %v697_v46 = vpop.permute.xlu0 %696 }
 0x197   : > { %v538_v52 = vcombine.high %v536_v51, %v536_v51  ;;  %v1704_v53 = vsel %vm540_vm1, %v1664_v37, %v536_v51 }
 0x198   : > { %v601_v54 = vrot.slane %v1704_v53, %v600_v49  ;;  %v633_v55 = vrot.slane %v1704_v53, %v632_v50 }
 0x199   : > { %v1710_v35 = vsel %vm540_vm1, %v1667_v38, %v538_v52 }
 0x19a   : > { %v605_v57 = vrot.slane %v1710_v35, %v600_v49  ;;  %v610_v58 = vmul.f32 %v601_v54, %v591_v47  ;;  %v637_v32 = vrot.slane %v1710_v35, %v632_v50  ;;  %v642_v60 = vmul.f32 %v633_v55, %v624_v56 }
 0x19b   : > { %v612_v61 = vmul.f32 %v601_v54, %v596_v39  ;;  %v608_v62 = vmul.f32 %v601_v54, %v586_v40  ;;  %v640_v37 = vmul.f32 %v633_v55, %v620_v10  ;;  %v644_v2 = vmul.f32 %v633_v55, %v628_v41 }
 0x19c   : > { %v611_v63 = vmul.f32 %v605_v57, %v591_v47  ;;  %v643_v0 = vmul.f32 %v637_v32, %v624_v56  ;;  %v613_v1 = vmul.f32 %v605_v57, %v596_v39  ;;  %v645_v3 = vmul.f32 %v637_v32, %v628_v41 }
 0x19d   : > { %v609_v4 = vmul.f32 %v605_v57, %v586_v40  ;;  %v641_v5 = vmul.f32 %v637_v32, %v620_v10  ;;  %v648_v6 = vadd.f32 %v640_v37, %v608_v62  ;;  %v607_v7 = vmul.f32 %v605_v57, %v1678_v14  ;;  %v830_v37 = vpop.permute.xlu1 %829 }
 0x19e   : > { %v651_v38 = vadd.f32 %v643_v0, %v611_v63  ;;  %v650_v8 = vadd.f32 %v642_v60, %v610_v58  ;;  %v653_v9 = vadd.f32 %v645_v3, %v613_v1  ;;  %v639_v13 = vmul.f32 %v637_v32, %v1681_v15  ;;  %v835_v63 = vpop.permute.xlu0 %834 }
 0x19f   : > { %v649_v12 = vadd.f32 %v641_v5, %v609_v4  ;;  %v652_v17 = vadd.f32 %v644_v2, %v612_v61  ;;  %v676_v18 = vadd.f32 %v662_v11, %v648_v6  ;;  %v606_v19 = vmul.f32 %v601_v54, %v1678_v14 }
 0x1a0   : > { %v638_v20 = vmul.f32 %v633_v55, %v1681_v15  ;;  %v679_v21 = vadd.f32 %v667_v59, %v651_v38  ;;  %v681_v22 = vadd.f32 %v672_v16, %v653_v9  ;;  %v647_v10 = vadd.f32 %v639_v13, %v607_v7 }
 0x1a1   : > { %v677_v23 = vadd.f32 %v662_v11, %v649_v12  ;;  %v553_v27 = vcombine.low %v1704_v53, %v1710_v35  ;;  %v678_v28 = vadd.f32 %v667_v59, %v650_v8  ;;  %v680_v29 = vadd.f32 %v672_v16, %v652_v17  ;;  %v866_v0 = vpop.permute.xlu1 %865 }
 0x1a2   : > { %v646_v24 = vadd.f32 %v638_v20, %v606_v19  ;;  %v675_v25 = vadd.f32 %v657_v48, %v647_v10  ;;  %v684_v30 = vmax.f32 %v676_v18, 0.0  ;;  %v689_v34 = vmax.f32 %v681_v22, 0.0  ;;  %v871_v1 = vpop.permute.xlu0 %870 }
 0x1a3   : > { %v685_v26 = vmax.f32 %v677_v23, 0.0  ;;  %v687_v14 = vmax.f32 %v679_v21, 0.0  ;;  %1336 = vst [vmem:[%s1721_s13 + $0x10] sm:$0x77] %v553_v27  ;;  %v688_v40 = vmax.f32 %v680_v29, 0.0  ;;  %v686_v42 = vmax.f32 %v678_v28, 0.0 }
 0x1a4   : > { %v674_v31 = vadd.f32 %v657_v48, %v646_v24  ;;  %v683_v36 = vmax.f32 %v675_v25, 0.0 }
 0x1a5   : > { %v1374_v43 = vpack.c.bf16 %v689_v34, %v687_v14  ;;  %v1376_v44 = vpack.c.bf16 %v688_v40, %v686_v42  ;;  %v840_v8 = vpop.permute.xlu1 %839 }
 0x1a6   : > { %v682_v15 = vmax.f32 %v674_v31, 0.0  ;;  %v1370_v39 = vpack.c.bf16 %v685_v26, %v683_v36  ;;  %v845_v9 = vpop.permute.xlu0 %844 }
 0x1a8   : > { %v1372_v41 = vpack.c.bf16 %v684_v30, %v682_v15  ;;  %1371 = vmatprep.subr.bf16.mxu1 %v1370_v39 }
 0x1aa   : > { %1373 = vmatpush1.bf16.msra.mxu1 %v1372_v41  ;;  %v881_v25 = vpop.permute.xlu0 %880 }
 0x1ab   : > { %1375 = vmatprep.subr.bf16.mxu1 %v1374_v43 }
 0x1ae   : > { %1377 = vmatpush1.bf16.msra.mxu1 %v1376_v44 }
 0x1b1   : > { %1345 = vmatmul.mubr.msk.f32.vlgmr.msra.gmra.mrb[0].mxu1 %vm445_vm0, %v1343_v45 }
 0x284   : > { %v768_v47 = vpop.f32.mrb[0].mxu1 }
 0x285   : > { %v769_v48 = vadd.f32 %v768_v47, %v697_v46  ;;  %v770_v49 = vpop.f32.mrb[1].mxu1 }
 0x286   : > { %v771_v50 = vadd.f32 %v770_v49, %v697_v46 }
 0x287   : > { %v775_v51 = vmul.f32 -0.5, %v769_v48  ;;  %v791_v52 = vsel %vm540_vm1, %v769_v48, %v1704_v53  ;;  %v795_v54 = vrot.slane %v769_v48, 3  ;;  %v773_v4 = vsub.f32 %v1704_v53, %v769_v48  ;;  %v899_v48 = vld [vmem:[%s1817_s3] sm:$0x3f] }
 0x288   : > { %v776_v55 = vmul.f32 -0.5, %v771_v50  ;;  %v792_v56 = vsel %vm540_vm1, %v771_v50, %v1710_v35  ;;  %v796_v57 = vrot.slane %v771_v50, 3  ;;  %v774_v38 = vsub.f32 %v1710_v35, %v771_v50 }
 0x289   : > { %v777_v58 = vmul.f32 1.442695, %v775_v51  ;;  %v799_v59 = vsel %vm540_vm1, %v795_v54, 0.0  ;;  %v809_v32 = vcombine.low %v791_v52, %v792_v56 }
 0x28a   : > { %v779_v60 = vmul.f32 1.442695, %v776_v55  ;;  %v800_v61 = vsel %vm540_vm1, %v796_v57, 0.0 }
 0x28b   : > { %1446 = vpow2.f32 %v777_v58  ;;  %1347 = vst [vmem:[%s1692_s24 + $0x8] sm:$0x77] %v809_v32  ;;  %v815_v62 = vcombine.low %v799_v59, %v800_v61 }
 0x28c   : > { %1448 = vpow2.f32 %v779_v60 }
 0x28d   : > { %1348 = vst [vmem:[%s1696_s12 + $0x8] sm:$0x77] %v815_v62 }
 0x295   : > { %v1447_v2 = vpop.eup %1446 }
 0x296   : > { %v1449_v3 = vpop.eup %1448  ;;  %v783_v5 = vrot.slane %v1447_v2, 3 }
 0x297   : > { %v784_v6 = vrot.slane %v1449_v3, 3 }
 0x298   : > { %v787_v7 = vmul.f32 %v783_v5, %v773_v4 }
 0x299   : > { %v788_v11 = vmul.f32 %v784_v6, %v774_v38 }
 0x29a   : > { %v1740_v12 = vsel %vm540_vm1, %v787_v7, %v1704_v53 }
 0x29b   : > { %v1744_v13 = vsel %vm540_vm1, %v788_v11, %v1710_v35  ;;  %v850_v16 = vrot.slane %v1740_v12, %v1657_v33  ;;  %v876_v35 = vpop.permute.xlu1 %875 }
 0x29c   : > { %v803_v17 = vcombine.low %v1740_v12, %v1744_v13  ;;  %v854_v18 = vrot.slane %v1744_v13, %v1657_v33 }
 0x29d   : > { %v855_v19 = vmul.f32 %v850_v16, %v830_v37  ;;  %v857_v20 = vmul.f32 %v850_v16, %v835_v63  ;;  %v859_v21 = vmul.f32 %v850_v16, %v840_v8  ;;  %v861_v22 = vmul.f32 %v850_v16, %v845_v9 }
 0x29e   : > { %v856_v23 = vmul.f32 %v854_v18, %v830_v37  ;;  %v858_v53 = vmul.f32 %v854_v18, %v835_v63  ;;  %v860_v10 = vmul.f32 %v854_v18, %v840_v8  ;;  %v862_v24 = vmul.f32 %v854_v18, %v845_v9  ;;  %1346 = vst [vmem:[%s1721_s13 + $0x8] sm:$0x77] %v803_v17  ;;  %v1078_v18 = vld [vmem:[%s1721_s13 + $0x10] sm:$0xff] (%p1570_p3) }
 0x29f   : > { %v883_v26 = vadd.f32 %v866_v0, %v855_v19  ;;  %v885_v27 = vadd.f32 %v871_v1, %v857_v20  ;;  %v887_v33 = vadd.f32 %v876_v35, %v859_v21  ;;  %v889_v14 = vadd.f32 %v881_v25, %v861_v22  ;;  %v904_v49 = vpop.permute.xlu1 %903  ;;  %1079 = vst [vmem:[%s1042_s23 + $0x20] sm:$0xff] (%p1570_p3), %v1078_v18 }
 0x2a0   : > { %v884_v28 = vadd.f32 %v866_v0, %v856_v23  ;;  %v886_v29 = vadd.f32 %v871_v1, %v858_v53  ;;  %v888_v30 = vadd.f32 %v876_v35, %v860_v10  ;;  %v890_v31 = vadd.f32 %v881_v25, %v862_v24 }
 0x2a1   : > { %v891_v34 = vmax.f32 %v883_v26, 0.0  ;;  %v893_v36 = vmax.f32 %v885_v27, 0.0  ;;  %v895_v44 = vmax.f32 %v887_v33, 0.0  ;;  %v897_v45 = vmax.f32 %v889_v14, 0.0 }
 0x2a2   : > { %v892_v15 = vmax.f32 %v884_v28, 0.0  ;;  %v894_v39 = vmax.f32 %v886_v29, 0.0  ;;  %v896_v40 = vmax.f32 %v888_v30, 0.0  ;;  %v898_v41 = vmax.f32 %v890_v31, 0.0 }
 0x2a3   : > { %v1380_v43 = vpack.c.bf16 %v893_v36, %v891_v34  ;;  %v1384_v47 = vpack.c.bf16 %v897_v45, %v895_v44 }
 0x2a4   : > { %v1378_v42 = vpack.c.bf16 %v894_v39, %v892_v15  ;;  %v1382_v46 = vpack.c.bf16 %v898_v41, %v896_v40 }
 0x2a5   : > { %v1076_v17 = vld [vmem:[%s1721_s13 + $0x8] sm:$0xff] (%p1570_p3) }
 0x2a6   : > { %1379 = vmatprep.subr.bf16.mxu0 %v1378_v42  ;;  %1077 = vst [vmem:[%s1042_s23 + $0x10] sm:$0xff] (%p1570_p3), %v1076_v17 }
 0x2a7   : > { %1381 = vmatpush1.bf16.msra.mxu0 %v1380_v43 }
 0x2a8   : > { %1383 = vmatprep.subr.bf16.mxu0 %v1382_v46 }
 0x2ab   : > { %1385 = vmatpush1.bf16.msra.mxu0 %v1384_v47 }
 0x2ae   : > { %1349 = vmatmul.mubr.msk.f32.vlgmr.msra.gmra.mrb[2].mxu0 %vm445_vm0, %v899_v48 }
 0x381   : > { %v975_v50 = vpop.f32.mrb[2].mxu0 }
 0x382   : > { %v976_v51 = vadd.f32 %v975_v50, %v904_v49  ;;  %v977_v52 = vpop.f32.mrb[3].mxu0 }
 0x383   : > { %v978_v54 = vadd.f32 %v977_v52, %v904_v49 }
 0x384   : > { %v982_v55 = vmul.f32 -0.5, %v976_v51  ;;  %v998_v56 = vsel %vm540_vm1, %v1740_v12, %v976_v51  ;;  %v1002_v57 = vrot.slane %v976_v51, 3  ;;  %v980_v3 = vsub.f32 %v1740_v12, %v976_v51 }
 0x385   : > { %v983_v58 = vmul.f32 -0.5, %v978_v54  ;;  %v999_v59 = vsel %vm540_vm1, %v1744_v13, %v978_v54  ;;  %v1003_v32 = vrot.slane %v978_v54, 3  ;;  %v981_v5 = vsub.f32 %v1744_v13, %v978_v54 }
 0x386   : > { %v984_v60 = vmul.f32 1.442695, %v982_v55  ;;  %v1006_v61 = vsel %vm540_vm1, 0.0, %v1002_v57  ;;  %v1015_v62 = vcombine.low %v998_v56, %v999_v59 }
 0x387   : > { %v986_v37 = vmul.f32 1.442695, %v983_v58  ;;  %v1007_v63 = vsel %vm540_vm1, 0.0, %v1003_v32 }
 0x388   : > { %1450 = vpow2.f32 %v984_v60  ;;  %1017 = vst [vmem:[%s1692_s24] sm:$0x77] %v1015_v62  ;;  %v1020_v0 = vcombine.low %v1006_v61, %v1007_v63 }
 0x389   : > { %1452 = vpow2.f32 %v986_v37 }
 0x38a   : > { %1022 = vst [vmem:[%s1696_s12] sm:$0x77] %v1020_v0 }
 0x392   : > { %v1451_v1 = vpop.eup %1450 }
 0x393   : > { %v1453_v2 = vpop.eup %1452  ;;  %v990_v4 = vrot.slane %v1451_v1, 3 }
 0x394   : > { %v991_v38 = vrot.slane %v1453_v2, 3 }
 0x395   : > { %v994_v6 = vmul.f32 %v990_v4, %v980_v3  ;;  %1037 = sbr.rel (!%p1570_p3) target bundleno = 932 (0x3a4), region = 44 }
 0x396   : > { %v995_v7 = vmul.f32 %v991_v38, %v981_v5 }
 0x397   : > { %v996_v8 = vsel %vm540_vm1, %v1740_v12, %v994_v6 }
 0x398   : > { %v997_v9 = vsel %vm540_vm1, %v1744_v13, %v995_v7 }
 0x399   : > { %v1010_v11 = vcombine.low %v996_v8, %v997_v9 }
 0x39b   : > { %1012 = vst [vmem:[%s1721_s13] sm:$0x77] %v1010_v11 }
 0x3a2   : > { %v1074_v16 = vld [vmem:[%s1721_s13] sm:$0xff] }
 0x3a3   : > { %1075 = vst [vmem:[%s1042_s23] sm:$0xff] %v1074_v16 }
 0x3a4 PF: > { %1085 = sbr.rel (!%p1570_p3) target bundleno = 939 (0x3ab), region = 82  ;;  %s1360_s29 = sshll.u32 (%p1570_p3), %s1484_s26, 3  ;;  %v1122_v12 = vld [vmem:[%s1692_s24] sm:$0xff] (%p1570_p3)  ;;  %v1124_v13 = vld [vmem:[%s1692_s24 + $0x8] sm:$0xff] (%p1570_p3)  ;;  %v1126_v19 = vld [vmem:[%s1692_s24 + $0x10] sm:$0xff] (%p1570_p3) }
 0x3a5   : > { %s1090_s8 = scalar_lea.vmem (%p1570_p3), %s1820_s6, %s1360_s29 }
 0x3a6   : > { %1123 = vst [vmem:[%s1090_s8] sm:$0xff] (%p1570_p3), %v1122_v12  ;;  %1125 = vst [vmem:[%s1090_s8 + $0x10] sm:$0xff] (%p1570_p3), %v1124_v13 }
 0x3a7   : > { %1127 = vst [vmem:[%s1090_s8 + $0x20] sm:$0xff] (%p1570_p3), %v1126_v19 }
 0x3ab PF: > { %1133 = sbr.rel (!%p1570_p3) target bundleno = 946 (0x3b2), region = 120  ;;  %s1361_s10 = sshll.u32 (%p1570_p3), %s1484_s26, 3  ;;  %v1170_v20 = vld [vmem:[%s1696_s12] sm:$0xff] (%p1570_p3)  ;;  %v1172_v21 = vld [vmem:[%s1696_s12 + $0x8] sm:$0xff] (%p1570_p3)  ;;  %v1174_v22 = vld [vmem:[%s1696_s12 + $0x10] sm:$0xff] (%p1570_p3) }
 0x3ac   : > { %s1138_s14 = scalar_lea.vmem (%p1570_p3), %s1821_s7, %s1361_s10 }
 0x3ad   : > { %1171 = vst [vmem:[%s1138_s14] sm:$0xff] (%p1570_p3), %v1170_v20  ;;  %1173 = vst [vmem:[%s1138_s14 + $0x10] sm:$0xff] (%p1570_p3), %v1172_v21 }
 0x3ae   : > { %1175 = vst [vmem:[%s1138_s14 + $0x20] sm:$0xff] (%p1570_p3), %v1174_v22 }
 0x3b2 PF: > { %s18_s28 = sadd.s32 1, %s1492_s28   ;;  %s1823_s24 = smov %s1480_s25 }
 0x3b3   : > { %p15_p9 = scmp.ge.s32.totalorder %s18_s28, 4   ;;  %s1824_s25 = smov %s1579_s11 }
 0x3b4   : > { %s1825_s26 = smov %s1488_s27  ;;  %s1826_s27 = smov %s1828_s30 }
 0x3b5   :  { %17 = sbr.rel (!%p15_p9) target bundleno = 3 (0x3), region = 223 }

</bundles_post_ra>
